<compile_context>
chip_gen: v6e
topology: v6e:2x2x1
jax: 0.10.0
libtpu: 0.0.40
codegen_flags: <defaults>
</compile_context>

<pallas_src>
import functools

import jax
import jax.numpy as jnp
from jax.experimental import pallas as pl
from jax.experimental.pallas import tpu as pltpu

EPS = 1e-5  # PyTorch GroupNorm default eps


def _round_up(x, m):
    return ((x + m - 1) // m) * m


def _pad_rows(x, n_pad):
    n = x.shape[0]
    if n == n_pad:
        return x
    return jnp.pad(x, ((0, n_pad - n),) + ((0, 0),) * (x.ndim - 1))


def _gn1(x, gamma, beta):
    # GroupNorm(num_groups=1, C) on 2-D (N, C): per-row mean/var over C + per-channel affine.
    mean = jnp.mean(x, axis=-1, keepdims=True)
    var = jnp.mean(jnp.square(x - mean), axis=-1, keepdims=True)
    return (x - mean) * jax.lax.rsqrt(var + EPS) * gamma + beta


# ----------------------------------------------------------------------------
# Kernel 1: all per-mode regression heads in one kernel.
# grid axis = actor row tile ("parallel"); modes statically unrolled inside.
# Weights for all modes are resident in VMEM (constant index_map).
# Output is lane-dense: (tile_N, M * O_pad) with O_pad a multiple of 128.
# ----------------------------------------------------------------------------
def _pred_kernel(x_ref, w1_ref, g1_ref, b1_ref, w2_ref, g2_ref, b2_ref,
                 w3_ref, b3_ref, out_ref, *, num_mods, o_pad):
    x = x_ref[...]                                                    # (tile_N, C)
    for m in range(num_mods):                                         # static unroll
        h = jnp.dot(x, w1_ref[m], preferred_element_type=jnp.float32)
        h = jnp.maximum(_gn1(h, g1_ref[m], b1_ref[m]), 0.0)
        h = jnp.dot(h, w2_ref[m], preferred_element_type=jnp.float32)
        h = _gn1(h, g2_ref[m], b2_ref[m])
        h = jnp.maximum(h + x, 0.0)                                   # residual + ReLU
        out_ref[:, m * o_pad:(m + 1) * o_pad] = (
            jnp.dot(h, w3_ref[m], preferred_element_type=jnp.float32) + b3_ref[m])


def pred_all_modes(actors_p, p, num_mods, o_pad, tile_n):
    N_pad, C = actors_p.shape
    M = num_mods
    O = p["w3"].shape[-1]
    # pad the final-linear weights/bias to a lane-dense (multiple of 128) width
    w3p = jnp.pad(p["w3"], ((0, 0), (0, 0), (0, o_pad - O)))
    b3p = jnp.pad(p["b3"], ((0, 0), (0, 0), (0, o_pad - O)))

    kernel = functools.partial(_pred_kernel, num_mods=M, o_pad=o_pad)
    return pl.pallas_call(
        kernel,
        out_shape=jax.ShapeDtypeStruct((N_pad, M * o_pad), jnp.float32),
        grid=(N_pad // tile_n,),
        in_specs=[
            pl.BlockSpec((tile_n, C), lambda i: (i, 0)),
            pl.BlockSpec((M, C, C), lambda i: (0, 0, 0)),
            pl.BlockSpec((M, 1, C), lambda i: (0, 0, 0)),
            pl.BlockSpec((M, 1, C), lambda i: (0, 0, 0)),
            pl.BlockSpec((M, C, C), lambda i: (0, 0, 0)),
            pl.BlockSpec((M, 1, C), lambda i: (0, 0, 0)),
            pl.BlockSpec((M, 1, C), lambda i: (0, 0, 0)),
            pl.BlockSpec((M, C, o_pad), lambda i: (0, 0, 0)),
            pl.BlockSpec((M, 1, o_pad), lambda i: (0, 0, 0)),
        ],
        out_specs=pl.BlockSpec((tile_n, M * o_pad), lambda i: (i, 0)),
        compiler_params=pltpu.CompilerParams(dimension_semantics=("parallel",)),
    )(actors_p, p["w1"], p["g1"], p["b1"], p["w2"], p["g2"], p["b2"], w3p, b3p)


# ----------------------------------------------------------------------------
# Kernel 2: fused AttDest + cls head, row-tiled over actors.
# actors are fed once per row tile (no M-fold HBM replication); dist is mode-major
# (M, N, 2).  The actor projection a @ waa is hoisted out of the mode loop.
# Final Linear(C, 1) is a lane reduce; output is a (tile_N, M) cls block.
# ----------------------------------------------------------------------------
def _att_cls_kernel(dist_ref, act_ref,
                    wd1_ref, bd1_ref, wd2_ref, gd2_ref, bd2_ref,
                    wad_ref, waa_ref, ga_ref, ba_ref,
                    wc1_ref, gc1_ref, bc1_ref, wc2_ref, gc2_ref, bc2_ref,
                    wc3_ref, bc3_ref, out_ref, *, num_mods):
    a = act_ref[...]                                                   # (tile_N, C)
    # actor half of the concat([dist_feat, agts]) @ W_agt — same for every mode.
    a_proj = jnp.dot(a, waa_ref[...], preferred_element_type=jnp.float32)

    cls_cols = []
    for m in range(num_mods):                                          # static unroll
        d = dist_ref[m]                                                # (tile_N, 2)
        # AttDest.dist : Linear(2,C)+ReLU, Linear(C,C,no-bias)+GN+ReLU
        h = jnp.maximum(
            jnp.dot(d, wd1_ref[...], preferred_element_type=jnp.float32) + bd1_ref[...],
            0.0)
        h = jnp.dot(h, wd2_ref[...], preferred_element_type=jnp.float32)
        h = jnp.maximum(_gn1(h, gd2_ref[...], bd2_ref[...]), 0.0)
        # AttDest.agt : Linear(2C,C,no-bias)+GN+ReLU  (weight split into halves)
        f = jnp.dot(h, wad_ref[...], preferred_element_type=jnp.float32) + a_proj
        f = jnp.maximum(_gn1(f, ga_ref[...], ba_ref[...]), 0.0)
        # cls : residual MLP + Linear(C,1)
        t = jnp.dot(f, wc1_ref[...], preferred_element_type=jnp.float32)
        t = jnp.maximum(_gn1(t, gc1_ref[...], bc1_ref[...]), 0.0)
        t = jnp.dot(t, wc2_ref[...], preferred_element_type=jnp.float32)
        t = _gn1(t, gc2_ref[...], bc2_ref[...])
        t = jnp.maximum(t + f, 0.0)
        # Linear(C,1) as a lane-reduce (XLU) instead of a 1-wide MXU matmul.
        cls_cols.append(jnp.sum(t * wc3_ref[...], axis=-1, keepdims=True) + bc3_ref[...])

    out_ref[...] = jnp.concatenate(cls_cols, axis=-1)                  # (tile_N, M)


def att_cls(dist_mm, actors_p, p, num_mods, tile_n):
    M = num_mods
    N_pad, C = actors_p.shape
    wc3_row = jnp.reshape(p["wc3"], (1, C))        # (C,1) -> (1,C) row

    def const2(shape):
        return pl.BlockSpec(shape, lambda i: (0, 0))

    kernel = functools.partial(_att_cls_kernel, num_mods=M)
    return pl.pallas_call(
        kernel,
        out_shape=jax.ShapeDtypeStruct((N_pad, M), jnp.float32),
        grid=(N_pad // tile_n,),
        in_specs=[
            pl.BlockSpec((M, tile_n, 2), lambda i: (0, i, 0)),   # dist (mode-major)
            pl.BlockSpec((tile_n, C), lambda i: (i, 0)),          # actors (no M replication)
            const2((2, C)), const2((1, C)),                       # wd1, bd1
            const2((C, C)), const2((1, C)), const2((1, C)),       # wd2, gd2, bd2
            const2((C, C)), const2((C, C)),                       # wad, waa
            const2((1, C)), const2((1, C)),                       # ga, ba
            const2((C, C)), const2((1, C)), const2((1, C)),       # wc1, gc1, bc1
            const2((C, C)), const2((1, C)), const2((1, C)),       # wc2, gc2, bc2
            const2((1, C)), const2((1, 1)),                       # wc3 (row), bc3
        ],
        out_specs=pl.BlockSpec((tile_n, M), lambda i: (i, 0)),
        compiler_params=pltpu.CompilerParams(dimension_semantics=("parallel",)),
    )(dist_mm, actors_p,
      p["wd1"], p["bd1"], p["wd2"], p["gd2"], p["bd2"],
      p["wad"], p["waa"], p["ga"], p["ba"],
      p["wc1"], p["gc1"], p["bc1"], p["wc2"], p["gc2"], p["bc2"],
      wc3_row, p["bc3"])


# ----------------------------------------------------------------------------
# Full LaneGcnHead forward (glue in plain JAX, hot paths in the two kernels above)
# ----------------------------------------------------------------------------
def lane_gcn_head_forward(actors, actor_idcs, actor_ctrs, params, num_mods, num_pred_points):
    N, C = actors.shape
    M, P = num_mods, num_pred_points
    O = 2 * P
    O_pad = _round_up(O, 128)

    # row tiling: multiple of 8, capped at 256 rows per tile
    tile_n = min(256, _round_up(N, 8))
    N_pad = _round_up(N, tile_n)

    actors_p = _pad_rows(actors, N_pad)
    ctrs_all = jnp.concatenate(actor_ctrs, axis=0)          # (N, 2)
    ctrs_p = _pad_rows(ctrs_all, N_pad)

    # per-mode regression heads -> lane-dense (N_pad, M*O_pad), no host transpose needed
    reg_flat = pred_all_modes(actors_p, params, M, O_pad, tile_n)
    reg_pad = reg_flat.reshape(N_pad, M, O_pad)[:, :, :O].reshape(N_pad, M, P, 2)

    # add actor centers (reg[idcs] = reg[idcs] + ctrs ; idcs partition all actors)
    reg_pad = reg_pad + ctrs_p[:, None, None, :]
    dest_ctrs = jax.lax.stop_gradient(reg_pad[:, :, -1])    # (N_pad, M, 2)

    # AttDest + cls (dist is fed mode-major so the kernel slices per-mode slabs cheaply)
    dist = ctrs_p[:, None, :] - dest_ctrs                   # (N_pad, M, 2)
    dist_mm = jnp.transpose(dist, (1, 0, 2))                # (M, N_pad, 2), tiny array
    cls = att_cls(dist_mm, actors_p, params, M, tile_n)[:N]  # (N, M)

    reg = reg_pad[:N]                                       # (N, M, P, 2)

    # per-actor sort of modes by descending score, reorder reg accordingly
    sort_idcs = jnp.argsort(-cls, axis=1)
    cls_sorted = jnp.take_along_axis(cls, sort_idcs, axis=1)
    reg_sorted = jnp.take_along_axis(reg, sort_idcs[:, :, None, None], axis=1)

    out = {"cls": [], "reg": [], "angular": []}
    for idcs in actor_idcs:
        out["cls"].append(jnp.take(cls_sorted, idcs, axis=0))
        out["reg"].append(jnp.take(reg_sorted, idcs, axis=0))
    return out


# ----------------------------------------------------------------------------
# Pure-JAX reference for a correctness check
# ----------------------------------------------------------------------------
def _reference_forward(actors, actor_idcs, actor_ctrs, p, M, P):
    N, C = actors.shape

    def linear_res(x, w1, g1, b1, w2, g2, b2):
        h = jnp.maximum(_gn1(x @ w1, g1, b1), 0.0)
        h = _gn1(h @ w2, g2, b2)
        return jnp.maximum(h + x, 0.0)

    regs = []
    for m in range(M):
        h = linear_res(actors, p["w1"][m], p["g1"][m], p["b1"][m],
                       p["w2"][m], p["g2"][m], p["b2"][m])
        regs.append(h @ p["w3"][m] + p["b3"][m])
    reg = jnp.stack(regs, axis=1).reshape(N, M, P, 2)
    ctrs_all = jnp.concatenate(actor_ctrs, 0)
    reg = reg + ctrs_all[:, None, None, :]
    dest_ctrs = reg[:, :, -1]
    dist = (ctrs_all[:, None, :] - dest_ctrs).reshape(-1, 2)
    h = jnp.maximum(dist @ p["wd1"] + p["bd1"], 0.0)
    h = jnp.maximum(_gn1(h @ p["wd2"], p["gd2"], p["bd2"]), 0.0)
    agts = jnp.broadcast_to(actors[:, None, :], (N, M, C)).reshape(-1, C)
    f = jnp.maximum(_gn1(h @ p["wad"] + agts @ p["waa"], p["ga"], p["ba"]), 0.0)
    t = linear_res(f, p["wc1"], p["gc1"], p["bc1"], p["wc2"], p["gc2"], p["bc2"])
    cls = (t @ p["wc3"] + p["bc3"]).reshape(N, M)
    sort_idcs = jnp.argsort(-cls, axis=1)
    cls_sorted = jnp.take_along_axis(cls, sort_idcs, axis=1)
    reg_sorted = jnp.take_along_axis(reg, sort_idcs[:, :, None, None], axis=1)
    return cls_sorted, reg_sorted


# ----------------------------------------------------------------------------
# Deterministic parameter construction
# ----------------------------------------------------------------------------
def init_params(key, C, M, out_dim):
    ks = iter(jax.random.split(key, 32))
    s = 0.1
    p = {
        # per-mode regression heads (stacked on mode axis)
        "w1": s * jax.random.normal(next(ks), (M, C, C), jnp.float32),
        "g1": jnp.ones((M, 1, C), jnp.float32),
        "b1": jnp.zeros((M, 1, C), jnp.float32),
        "w2": s * jax.random.normal(next(ks), (M, C, C), jnp.float32),
        "g2": jnp.ones((M, 1, C), jnp.float32),
        "b2": jnp.zeros((M, 1, C), jnp.float32),
        "w3": s * jax.random.normal(next(ks), (M, C, out_dim), jnp.float32),
        "b3": s * jax.random.normal(next(ks), (M, 1, out_dim), jnp.float32),
        # AttDest
        "wd1": s * jax.random.normal(next(ks), (2, C), jnp.float32),
        "bd1": s * jax.random.normal(next(ks), (1, C), jnp.float32),
        "wd2": s * jax.random.normal(next(ks), (C, C), jnp.float32),
        "gd2": jnp.ones((1, C), jnp.float32),
        "bd2": jnp.zeros((1, C), jnp.float32),
        "wad": s * jax.random.normal(next(ks), (C, C), jnp.float32),
        "waa": s * jax.random.normal(next(ks), (C, C), jnp.float32),
        "ga": jnp.ones((1, C), jnp.float32),
        "ba": jnp.zeros((1, C), jnp.float32),
        # cls head
        "wc1": s * jax.random.normal(next(ks), (C, C), jnp.float32),
        "gc1": jnp.ones((1, C), jnp.float32),
        "bc1": jnp.zeros((1, C), jnp.float32),
        "wc2": s * jax.random.normal(next(ks), (C, C), jnp.float32),
        "gc2": jnp.ones((1, C), jnp.float32),
        "bc2": jnp.zeros((1, C), jnp.float32),
        "wc3": s * jax.random.normal(next(ks), (C, 1), jnp.float32),
        "bc3": s * jax.random.normal(next(ks), (1, 1), jnp.float32),
    }
    return p


if __name__ == "__main__":
    n_actor = 128          # feature width (module default n_actor)
    num_mods = 6
    num_pred_points = 30
    sample_sizes = [5, 3]  # 2-sample "batch"; actor_idcs partition the actor axis
    N = sum(sample_sizes)

    key = jax.random.PRNGKey(0)
    k_act, k_ctr, k_par = jax.random.split(key, 3)

    actors = jax.random.normal(k_act, (N, n_actor), jnp.float32)
    ctr_keys = jax.random.split(k_ctr, len(sample_sizes))
    actor_ctrs = [jax.random.normal(ctr_keys[i], (sz, 2), jnp.float32)
                  for i, sz in enumerate(sample_sizes)]
    offs = [0, sample_sizes[0]]
    actor_idcs = [jnp.arange(offs[i], offs[i] + sz) for i, sz in enumerate(sample_sizes)]

    params = init_params(k_par, n_actor, num_mods, 2 * num_pred_points)

    out = lane_gcn_head_forward(actors, actor_idcs, actor_ctrs, params,
                                num_mods, num_pred_points)
    jax.block_until_ready(out)

    # sanity check against a pure-JAX reference (all-f32 path -> tight tolerance)
    cls_ref, reg_ref = _reference_forward(actors, actor_idcs, actor_ctrs, params,
                                          num_mods, num_pred_points)
    cls_got = jnp.concatenate(out["cls"], 0)
    reg_got = jnp.concatenate(out["reg"], 0)
    assert jnp.allclose(cls_got, cls_ref, atol=1e-4, rtol=1e-4)
    assert jnp.allclose(reg_got, reg_ref, atol=1e-4, rtol=1e-4)

    print("KERNEL_OK")
</pallas_src>

<mosaic_0001>
module attributes {stable_mosaic.version = 11 : i64} {
  func.func @_pred_kernel(%arg0: i32, %arg1: memref<8x128xf32, #tpu.memory_space<vmem>>, %arg2: memref<6x128x128xf32, #tpu.memory_space<vmem>>, %arg3: memref<6x1x128xf32, #tpu.memory_space<vmem>>, %arg4: memref<6x1x128xf32, #tpu.memory_space<vmem>>, %arg5: memref<6x128x128xf32, #tpu.memory_space<vmem>>, %arg6: memref<6x1x128xf32, #tpu.memory_space<vmem>>, %arg7: memref<6x1x128xf32, #tpu.memory_space<vmem>>, %arg8: memref<6x128x128xf32, #tpu.memory_space<vmem>>, %arg9: memref<6x1x128xf32, #tpu.memory_space<vmem>>, %arg10: memref<8x768xf32, #tpu.memory_space<vmem>>) attributes {dimension_semantics = [#tpu.dimension_semantics<parallel>], iteration_bounds = array<i64: 1>, scalar_prefetch = 0 : i64, scratch_operands = 0 : i64, tpu.core_type = #tpu.core_type<tc>, window_params = [{transform_indices = @transform_0, window_bounds = array<i64: 8, 128>}, {pipeline_mode = #tpu.pipeline_mode<synchronous>, transform_indices = @transform_1, window_bounds = array<i64: 6, 128, 128>}, {pipeline_mode = #tpu.pipeline_mode<synchronous>, transform_indices = @transform_2, window_bounds = array<i64: 6, 1, 128>}, {pipeline_mode = #tpu.pipeline_mode<synchronous>, transform_indices = @transform_3, window_bounds = array<i64: 6, 1, 128>}, {pipeline_mode = #tpu.pipeline_mode<synchronous>, transform_indices = @transform_4, window_bounds = array<i64: 6, 128, 128>}, {pipeline_mode = #tpu.pipeline_mode<synchronous>, transform_indices = @transform_5, window_bounds = array<i64: 6, 1, 128>}, {pipeline_mode = #tpu.pipeline_mode<synchronous>, transform_indices = @transform_6, window_bounds = array<i64: 6, 1, 128>}, {pipeline_mode = #tpu.pipeline_mode<synchronous>, transform_indices = @transform_7, window_bounds = array<i64: 6, 128, 128>}, {pipeline_mode = #tpu.pipeline_mode<synchronous>, transform_indices = @transform_8, window_bounds = array<i64: 6, 1, 128>}, {transform_indices = @transform_9, window_bounds = array<i64: 8, 768>}]} {
    %c0 = arith.constant 0 : index
    %c0_0 = arith.constant 0 : index
    %0 = vector.load %arg1[%c0, %c0_0] : memref<8x128xf32, #tpu.memory_space<vmem>>, vector<8x128xf32>
    %c0_1 = arith.constant 0 : index
    %c0_2 = arith.constant 0 : index
    %c0_3 = arith.constant 0 : index
    %1 = vector.load %arg2[%c0_1, %c0_2, %c0_3] : memref<6x128x128xf32, #tpu.memory_space<vmem>>, vector<1x128x128xf32>
    %2 = vector.shape_cast %1 : vector<1x128x128xf32> to vector<128x128xf32>
    %cst = arith.constant dense<0.000000e+00> : vector<8x128xf32>
    %3 = tpu.matmul %0, %2, %cst {dimension_numbers = #tpu.dot_dimension_numbers<[1], [0], [0], [1], [0, 0, 1, 1], [], []>} : vector<8x128xf32>, vector<128x128xf32>, vector<8x128xf32> -> vector<8x128xf32>
    %c0_4 = arith.constant 0 : index
    %c0_5 = arith.constant 0 : index
    %c0_6 = arith.constant 0 : index
    %4 = vector.load %arg3[%c0_4, %c0_5, %c0_6] : memref<6x1x128xf32, #tpu.memory_space<vmem>>, vector<1x1x128xf32>
    %5 = vector.shape_cast %4 : vector<1x1x128xf32> to vector<1x128xf32>
    %c0_7 = arith.constant 0 : index
    %c0_8 = arith.constant 0 : index
    %c0_9 = arith.constant 0 : index
    %6 = vector.load %arg4[%c0_7, %c0_8, %c0_9] : memref<6x1x128xf32, #tpu.memory_space<vmem>>, vector<1x1x128xf32>
    %7 = vector.shape_cast %6 : vector<1x1x128xf32> to vector<1x128xf32>
    %cst_10 = arith.constant dense<0.000000e+00> : vector<8xf32>
    %8 = vector.multi_reduction <add>, %3, %cst_10 [1] : vector<8x128xf32> to vector<8xf32>
    %9 = vector.shape_cast %8 : vector<8xf32> to vector<8x1xf32>
    %cst_11 = arith.constant 1.280000e+02 : f32
    %10 = vector.broadcast %cst_11 : f32 to vector<8x1xf32>
    %11 = arith.divf %9, %10 : vector<8x1xf32>
    %12 = vector.broadcast %11 : vector<8x1xf32> to vector<8x128xf32>
    %13 = arith.subf %3, %12 : vector<8x128xf32>
    %14 = arith.mulf %13, %13 : vector<8x128xf32>
    %cst_12 = arith.constant dense<0.000000e+00> : vector<8xf32>
    %15 = vector.multi_reduction <add>, %14, %cst_12 [1] : vector<8x128xf32> to vector<8xf32>
    %16 = vector.shape_cast %15 : vector<8xf32> to vector<8x1xf32>
    %cst_13 = arith.constant 1.280000e+02 : f32
    %17 = vector.broadcast %cst_13 : f32 to vector<8x1xf32>
    %18 = arith.divf %16, %17 : vector<8x1xf32>
    %19 = vector.broadcast %11 : vector<8x1xf32> to vector<8x128xf32>
    %20 = arith.subf %3, %19 : vector<8x128xf32>
    %cst_14 = arith.constant 9.99999974E-6 : f32
    %21 = vector.broadcast %cst_14 : f32 to vector<8x1xf32>
    %22 = arith.addf %18, %21 : vector<8x1xf32>
    %23 = math.rsqrt %22 : vector<8x1xf32>
    %24 = vector.broadcast %23 : vector<8x1xf32> to vector<8x128xf32>
    %25 = arith.mulf %20, %24 : vector<8x128xf32>
    %26 = vector.broadcast %5 : vector<1x128xf32> to vector<8x128xf32>
    %27 = arith.mulf %25, %26 : vector<8x128xf32>
    %28 = vector.broadcast %7 : vector<1x128xf32> to vector<8x128xf32>
    %29 = arith.addf %27, %28 : vector<8x128xf32>
    %cst_15 = arith.constant 0.000000e+00 : f32
    %30 = vector.broadcast %cst_15 : f32 to vector<8x128xf32>
    %31 = arith.maximumf %29, %30 : vector<8x128xf32>
    %c0_16 = arith.constant 0 : index
    %c0_17 = arith.constant 0 : index
    %c0_18 = arith.constant 0 : index
    %32 = vector.load %arg5[%c0_16, %c0_17, %c0_18] : memref<6x128x128xf32, #tpu.memory_space<vmem>>, vector<1x128x128xf32>
    %33 = vector.shape_cast %32 : vector<1x128x128xf32> to vector<128x128xf32>
    %cst_19 = arith.constant dense<0.000000e+00> : vector<8x128xf32>
    %34 = tpu.matmul %31, %33, %cst_19 {dimension_numbers = #tpu.dot_dimension_numbers<[1], [0], [0], [1], [0, 0, 1, 1], [], []>} : vector<8x128xf32>, vector<128x128xf32>, vector<8x128xf32> -> vector<8x128xf32>
    %c0_20 = arith.constant 0 : index
    %c0_21 = arith.constant 0 : index
    %c0_22 = arith.constant 0 : index
    %35 = vector.load %arg6[%c0_20, %c0_21, %c0_22] : memref<6x1x128xf32, #tpu.memory_space<vmem>>, vector<1x1x128xf32>
    %36 = vector.shape_cast %35 : vector<1x1x128xf32> to vector<1x128xf32>
    %c0_23 = arith.constant 0 : index
    %c0_24 = arith.constant 0 : index
    %c0_25 = arith.constant 0 : index
    %37 = vector.load %arg7[%c0_23, %c0_24, %c0_25] : memref<6x1x128xf32, #tpu.memory_space<vmem>>, vector<1x1x128xf32>
    %38 = vector.shape_cast %37 : vector<1x1x128xf32> to vector<1x128xf32>
    %cst_26 = arith.constant dense<0.000000e+00> : vector<8xf32>
    %39 = vector.multi_reduction <add>, %34, %cst_26 [1] : vector<8x128xf32> to vector<8xf32>
    %40 = vector.shape_cast %39 : vector<8xf32> to vector<8x1xf32>
    %cst_27 = arith.constant 1.280000e+02 : f32
    %41 = vector.broadcast %cst_27 : f32 to vector<8x1xf32>
    %42 = arith.divf %40, %41 : vector<8x1xf32>
    %43 = vector.broadcast %42 : vector<8x1xf32> to vector<8x128xf32>
    %44 = arith.subf %34, %43 : vector<8x128xf32>
    %45 = arith.mulf %44, %44 : vector<8x128xf32>
    %cst_28 = arith.constant dense<0.000000e+00> : vector<8xf32>
    %46 = vector.multi_reduction <add>, %45, %cst_28 [1] : vector<8x128xf32> to vector<8xf32>
    %47 = vector.shape_cast %46 : vector<8xf32> to vector<8x1xf32>
    %cst_29 = arith.constant 1.280000e+02 : f32
    %48 = vector.broadcast %cst_29 : f32 to vector<8x1xf32>
    %49 = arith.divf %47, %48 : vector<8x1xf32>
    %50 = vector.broadcast %42 : vector<8x1xf32> to vector<8x128xf32>
    %51 = arith.subf %34, %50 : vector<8x128xf32>
    %cst_30 = arith.constant 9.99999974E-6 : f32
    %52 = vector.broadcast %cst_30 : f32 to vector<8x1xf32>
    %53 = arith.addf %49, %52 : vector<8x1xf32>
    %54 = math.rsqrt %53 : vector<8x1xf32>
    %55 = vector.broadcast %54 : vector<8x1xf32> to vector<8x128xf32>
    %56 = arith.mulf %51, %55 : vector<8x128xf32>
    %57 = vector.broadcast %36 : vector<1x128xf32> to vector<8x128xf32>
    %58 = arith.mulf %56, %57 : vector<8x128xf32>
    %59 = vector.broadcast %38 : vector<1x128xf32> to vector<8x128xf32>
    %60 = arith.addf %58, %59 : vector<8x128xf32>
    %61 = arith.addf %60, %0 : vector<8x128xf32>
    %cst_31 = arith.constant 0.000000e+00 : f32
    %62 = vector.broadcast %cst_31 : f32 to vector<8x128xf32>
    %63 = arith.maximumf %61, %62 : vector<8x128xf32>
    %c0_32 = arith.constant 0 : index
    %c0_33 = arith.constant 0 : index
    %c0_34 = arith.constant 0 : index
    %64 = vector.load %arg8[%c0_32, %c0_33, %c0_34] : memref<6x128x128xf32, #tpu.memory_space<vmem>>, vector<1x128x128xf32>
    %65 = vector.shape_cast %64 : vector<1x128x128xf32> to vector<128x128xf32>
    %cst_35 = arith.constant dense<0.000000e+00> : vector<8x128xf32>
    %66 = tpu.matmul %63, %65, %cst_35 {dimension_numbers = #tpu.dot_dimension_numbers<[1], [0], [0], [1], [0, 0, 1, 1], [], []>} : vector<8x128xf32>, vector<128x128xf32>, vector<8x128xf32> -> vector<8x128xf32>
    %c0_36 = arith.constant 0 : index
    %c0_37 = arith.constant 0 : index
    %c0_38 = arith.constant 0 : index
    %67 = vector.load %arg9[%c0_36, %c0_37, %c0_38] : memref<6x1x128xf32, #tpu.memory_space<vmem>>, vector<1x1x128xf32>
    %68 = vector.shape_cast %67 : vector<1x1x128xf32> to vector<1x128xf32>
    %69 = vector.broadcast %68 : vector<1x128xf32> to vector<8x128xf32>
    %70 = arith.addf %66, %69 : vector<8x128xf32>
    %c0_39 = arith.constant 0 : index
    %c0_40 = arith.constant 0 : index
    %71 = vector.load %arg10[%c0_39, %c0_40] : memref<8x768xf32, #tpu.memory_space<vmem>>, vector<8x128xf32>
    tpu.vector_store %arg10[%c0_39, %c0_40], %70 {strides = array<i32>} : memref<8x768xf32, #tpu.memory_space<vmem>>, vector<8x128xf32>,
    %c1 = arith.constant 1 : index
    %c0_41 = arith.constant 0 : index
    %c0_42 = arith.constant 0 : index
    %72 = vector.load %arg2[%c1, %c0_41, %c0_42] : memref<6x128x128xf32, #tpu.memory_space<vmem>>, vector<1x128x128xf32>
    %73 = vector.shape_cast %72 : vector<1x128x128xf32> to vector<128x128xf32>
    %cst_43 = arith.constant dense<0.000000e+00> : vector<8x128xf32>
    %74 = tpu.matmul %0, %73, %cst_43 {dimension_numbers = #tpu.dot_dimension_numbers<[1], [0], [0], [1], [0, 0, 1, 1], [], []>} : vector<8x128xf32>, vector<128x128xf32>, vector<8x128xf32> -> vector<8x128xf32>
    %c1_44 = arith.constant 1 : index
    %c0_45 = arith.constant 0 : index
    %c0_46 = arith.constant 0 : index
    %75 = vector.load %arg3[%c1_44, %c0_45, %c0_46] : memref<6x1x128xf32, #tpu.memory_space<vmem>>, vector<1x1x128xf32>
    %76 = vector.shape_cast %75 : vector<1x1x128xf32> to vector<1x128xf32>
    %c1_47 = arith.constant 1 : index
    %c0_48 = arith.constant 0 : index
    %c0_49 = arith.constant 0 : index
    %77 = vector.load %arg4[%c1_47, %c0_48, %c0_49] : memref<6x1x128xf32, #tpu.memory_space<vmem>>, vector<1x1x128xf32>
    %78 = vector.shape_cast %77 : vector<1x1x128xf32> to vector<1x128xf32>
    %cst_50 = arith.constant dense<0.000000e+00> : vector<8xf32>
    %79 = vector.multi_reduction <add>, %74, %cst_50 [1] : vector<8x128xf32> to vector<8xf32>
    %80 = vector.shape_cast %79 : vector<8xf32> to vector<8x1xf32>
    %cst_51 = arith.constant 1.280000e+02 : f32
    %81 = vector.broadcast %cst_51 : f32 to vector<8x1xf32>
    %82 = arith.divf %80, %81 : vector<8x1xf32>
    %83 = vector.broadcast %82 : vector<8x1xf32> to vector<8x128xf32>
    %84 = arith.subf %74, %83 : vector<8x128xf32>
    %85 = arith.mulf %84, %84 : vector<8x128xf32>
    %cst_52 = arith.constant dense<0.000000e+00> : vector<8xf32>
    %86 = vector.multi_reduction <add>, %85, %cst_52 [1] : vector<8x128xf32> to vector<8xf32>
    %87 = vector.shape_cast %86 : vector<8xf32> to vector<8x1xf32>
    %cst_53 = arith.constant 1.280000e+02 : f32
    %88 = vector.broadcast %cst_53 : f32 to vector<8x1xf32>
    %89 = arith.divf %87, %88 : vector<8x1xf32>
    %90 = vector.broadcast %82 : vector<8x1xf32> to vector<8x128xf32>
    %91 = arith.subf %74, %90 : vector<8x128xf32>
    %cst_54 = arith.constant 9.99999974E-6 : f32
    %92 = vector.broadcast %cst_54 : f32 to vector<8x1xf32>
    %93 = arith.addf %89, %92 : vector<8x1xf32>
    %94 = math.rsqrt %93 : vector<8x1xf32>
    %95 = vector.broadcast %94 : vector<8x1xf32> to vector<8x128xf32>
    %96 = arith.mulf %91, %95 : vector<8x128xf32>
    %97 = vector.broadcast %76 : vector<1x128xf32> to vector<8x128xf32>
    %98 = arith.mulf %96, %97 : vector<8x128xf32>
    %99 = vector.broadcast %78 : vector<1x128xf32> to vector<8x128xf32>
    %100 = arith.addf %98, %99 : vector<8x128xf32>
    %cst_55 = arith.constant 0.000000e+00 : f32
    %101 = vector.broadcast %cst_55 : f32 to vector<8x128xf32>
    %102 = arith.maximumf %100, %101 : vector<8x128xf32>
    %c1_56 = arith.constant 1 : index
    %c0_57 = arith.constant 0 : index
    %c0_58 = arith.constant 0 : index
    %103 = vector.load %arg5[%c1_56, %c0_57, %c0_58] : memref<6x128x128xf32, #tpu.memory_space<vmem>>, vector<1x128x128xf32>
    %104 = vector.shape_cast %103 : vector<1x128x128xf32> to vector<128x128xf32>
    %cst_59 = arith.constant dense<0.000000e+00> : vector<8x128xf32>
    %105 = tpu.matmul %102, %104, %cst_59 {dimension_numbers = #tpu.dot_dimension_numbers<[1], [0], [0], [1], [0, 0, 1, 1], [], []>} : vector<8x128xf32>, vector<128x128xf32>, vector<8x128xf32> -> vector<8x128xf32>
    %c1_60 = arith.constant 1 : index
    %c0_61 = arith.constant 0 : index
    %c0_62 = arith.constant 0 : index
    %106 = vector.load %arg6[%c1_60, %c0_61, %c0_62] : memref<6x1x128xf32, #tpu.memory_space<vmem>>, vector<1x1x128xf32>
    %107 = vector.shape_cast %106 : vector<1x1x128xf32> to vector<1x128xf32>
    %c1_63 = arith.constant 1 : index
    %c0_64 = arith.constant 0 : index
    %c0_65 = arith.constant 0 : index
    %108 = vector.load %arg7[%c1_63, %c0_64, %c0_65] : memref<6x1x128xf32, #tpu.memory_space<vmem>>, vector<1x1x128xf32>
    %109 = vector.shape_cast %108 : vector<1x1x128xf32> to vector<1x128xf32>
    %cst_66 = arith.constant dense<0.000000e+00> : vector<8xf32>
    %110 = vector.multi_reduction <add>, %105, %cst_66 [1] : vector<8x128xf32> to vector<8xf32>
    %111 = vector.shape_cast %110 : vector<8xf32> to vector<8x1xf32>
    %cst_67 = arith.constant 1.280000e+02 : f32
    %112 = vector.broadcast %cst_67 : f32 to vector<8x1xf32>
    %113 = arith.divf %111, %112 : vector<8x1xf32>
    %114 = vector.broadcast %113 : vector<8x1xf32> to vector<8x128xf32>
    %115 = arith.subf %105, %114 : vector<8x128xf32>
    %116 = arith.mulf %115, %115 : vector<8x128xf32>
    %cst_68 = arith.constant dense<0.000000e+00> : vector<8xf32>
    %117 = vector.multi_reduction <add>, %116, %cst_68 [1] : vector<8x128xf32> to vector<8xf32>
    %118 = vector.shape_cast %117 : vector<8xf32> to vector<8x1xf32>
    %cst_69 = arith.constant 1.280000e+02 : f32
    %119 = vector.broadcast %cst_69 : f32 to vector<8x1xf32>
    %120 = arith.divf %118, %119 : vector<8x1xf32>
    %121 = vector.broadcast %113 : vector<8x1xf32> to vector<8x128xf32>
    %122 = arith.subf %105, %121 : vector<8x128xf32>
    %cst_70 = arith.constant 9.99999974E-6 : f32
    %123 = vector.broadcast %cst_70 : f32 to vector<8x1xf32>
    %124 = arith.addf %120, %123 : vector<8x1xf32>
    %125 = math.rsqrt %124 : vector<8x1xf32>
    %126 = vector.broadcast %125 : vector<8x1xf32> to vector<8x128xf32>
    %127 = arith.mulf %122, %126 : vector<8x128xf32>
    %128 = vector.broadcast %107 : vector<1x128xf32> to vector<8x128xf32>
    %129 = arith.mulf %127, %128 : vector<8x128xf32>
    %130 = vector.broadcast %109 : vector<1x128xf32> to vector<8x128xf32>
    %131 = arith.addf %129, %130 : vector<8x128xf32>
    %132 = arith.addf %131, %0 : vector<8x128xf32>
    %cst_71 = arith.constant 0.000000e+00 : f32
    %133 = vector.broadcast %cst_71 : f32 to vector<8x128xf32>
    %134 = arith.maximumf %132, %133 : vector<8x128xf32>
    %c1_72 = arith.constant 1 : index
    %c0_73 = arith.constant 0 : index
    %c0_74 = arith.constant 0 : index
    %135 = vector.load %arg8[%c1_72, %c0_73, %c0_74] : memref<6x128x128xf32, #tpu.memory_space<vmem>>, vector<1x128x128xf32>
    %136 = vector.shape_cast %135 : vector<1x128x128xf32> to vector<128x128xf32>
    %cst_75 = arith.constant dense<0.000000e+00> : vector<8x128xf32>
    %137 = tpu.matmul %134, %136, %cst_75 {dimension_numbers = #tpu.dot_dimension_numbers<[1], [0], [0], [1], [0, 0, 1, 1], [], []>} : vector<8x128xf32>, vector<128x128xf32>, vector<8x128xf32> -> vector<8x128xf32>
    %c1_76 = arith.constant 1 : index
    %c0_77 = arith.constant 0 : index
    %c0_78 = arith.constant 0 : index
    %138 = vector.load %arg9[%c1_76, %c0_77, %c0_78] : memref<6x1x128xf32, #tpu.memory_space<vmem>>, vector<1x1x128xf32>
    %139 = vector.shape_cast %138 : vector<1x1x128xf32> to vector<1x128xf32>
    %140 = vector.broadcast %139 : vector<1x128xf32> to vector<8x128xf32>
    %141 = arith.addf %137, %140 : vector<8x128xf32>
    %c0_79 = arith.constant 0 : index
    %c128 = arith.constant 128 : index
    %142 = vector.load %arg10[%c0_79, %c128] : memref<8x768xf32, #tpu.memory_space<vmem>>, vector<8x128xf32>
    tpu.vector_store %arg10[%c0_79, %c128], %141 {strides = array<i32>} : memref<8x768xf32, #tpu.memory_space<vmem>>, vector<8x128xf32>,
    %c2 = arith.constant 2 : index
    %c0_80 = arith.constant 0 : index
    %c0_81 = arith.constant 0 : index
    %143 = vector.load %arg2[%c2, %c0_80, %c0_81] : memref<6x128x128xf32, #tpu.memory_space<vmem>>, vector<1x128x128xf32>
    %144 = vector.shape_cast %143 : vector<1x128x128xf32> to vector<128x128xf32>
    %cst_82 = arith.constant dense<0.000000e+00> : vector<8x128xf32>
    %145 = tpu.matmul %0, %144, %cst_82 {dimension_numbers = #tpu.dot_dimension_numbers<[1], [0], [0], [1], [0, 0, 1, 1], [], []>} : vector<8x128xf32>, vector<128x128xf32>, vector<8x128xf32> -> vector<8x128xf32>
    %c2_83 = arith.constant 2 : index
    %c0_84 = arith.constant 0 : index
    %c0_85 = arith.constant 0 : index
    %146 = vector.load %arg3[%c2_83, %c0_84, %c0_85] : memref<6x1x128xf32, #tpu.memory_space<vmem>>, vector<1x1x128xf32>
    %147 = vector.shape_cast %146 : vector<1x1x128xf32> to vector<1x128xf32>
    %c2_86 = arith.constant 2 : index
    %c0_87 = arith.constant 0 : index
    %c0_88 = arith.constant 0 : index
    %148 = vector.load %arg4[%c2_86, %c0_87, %c0_88] : memref<6x1x128xf32, #tpu.memory_space<vmem>>, vector<1x1x128xf32>
    %149 = vector.shape_cast %148 : vector<1x1x128xf32> to vector<1x128xf32>
    %cst_89 = arith.constant dense<0.000000e+00> : vector<8xf32>
    %150 = vector.multi_reduction <add>, %145, %cst_89 [1] : vector<8x128xf32> to vector<8xf32>
    %151 = vector.shape_cast %150 : vector<8xf32> to vector<8x1xf32>
    %cst_90 = arith.constant 1.280000e+02 : f32
    %152 = vector.broadcast %cst_90 : f32 to vector<8x1xf32>
    %153 = arith.divf %151, %152 : vector<8x1xf32>
    %154 = vector.broadcast %153 : vector<8x1xf32> to vector<8x128xf32>
    %155 = arith.subf %145, %154 : vector<8x128xf32>
    %156 = arith.mulf %155, %155 : vector<8x128xf32>
    %cst_91 = arith.constant dense<0.000000e+00> : vector<8xf32>
    %157 = vector.multi_reduction <add>, %156, %cst_91 [1] : vector<8x128xf32> to vector<8xf32>
    %158 = vector.shape_cast %157 : vector<8xf32> to vector<8x1xf32>
    %cst_92 = arith.constant 1.280000e+02 : f32
    %159 = vector.broadcast %cst_92 : f32 to vector<8x1xf32>
    %160 = arith.divf %158, %159 : vector<8x1xf32>
    %161 = vector.broadcast %153 : vector<8x1xf32> to vector<8x128xf32>
    %162 = arith.subf %145, %161 : vector<8x128xf32>
    %cst_93 = arith.constant 9.99999974E-6 : f32
    %163 = vector.broadcast %cst_93 : f32 to vector<8x1xf32>
    %164 = arith.addf %160, %163 : vector<8x1xf32>
    %165 = math.rsqrt %164 : vector<8x1xf32>
    %166 = vector.broadcast %165 : vector<8x1xf32> to vector<8x128xf32>
    %167 = arith.mulf %162, %166 : vector<8x128xf32>
    %168 = vector.broadcast %147 : vector<1x128xf32> to vector<8x128xf32>
    %169 = arith.mulf %167, %168 : vector<8x128xf32>
    %170 = vector.broadcast %149 : vector<1x128xf32> to vector<8x128xf32>
    %171 = arith.addf %169, %170 : vector<8x128xf32>
    %cst_94 = arith.constant 0.000000e+00 : f32
    %172 = vector.broadcast %cst_94 : f32 to vector<8x128xf32>
    %173 = arith.maximumf %171, %172 : vector<8x128xf32>
    %c2_95 = arith.constant 2 : index
    %c0_96 = arith.constant 0 : index
    %c0_97 = arith.constant 0 : index
    %174 = vector.load %arg5[%c2_95, %c0_96, %c0_97] : memref<6x128x128xf32, #tpu.memory_space<vmem>>, vector<1x128x128xf32>
    %175 = vector.shape_cast %174 : vector<1x128x128xf32> to vector<128x128xf32>
    %cst_98 = arith.constant dense<0.000000e+00> : vector<8x128xf32>
    %176 = tpu.matmul %173, %175, %cst_98 {dimension_numbers = #tpu.dot_dimension_numbers<[1], [0], [0], [1], [0, 0, 1, 1], [], []>} : vector<8x128xf32>, vector<128x128xf32>, vector<8x128xf32> -> vector<8x128xf32>
    %c2_99 = arith.constant 2 : index
    %c0_100 = arith.constant 0 : index
    %c0_101 = arith.constant 0 : index
    %177 = vector.load %arg6[%c2_99, %c0_100, %c0_101] : memref<6x1x128xf32, #tpu.memory_space<vmem>>, vector<1x1x128xf32>
    %178 = vector.shape_cast %177 : vector<1x1x128xf32> to vector<1x128xf32>
    %c2_102 = arith.constant 2 : index
    %c0_103 = arith.constant 0 : index
    %c0_104 = arith.constant 0 : index
    %179 = vector.load %arg7[%c2_102, %c0_103, %c0_104] : memref<6x1x128xf32, #tpu.memory_space<vmem>>, vector<1x1x128xf32>
    %180 = vector.shape_cast %179 : vector<1x1x128xf32> to vector<1x128xf32>
    %cst_105 = arith.constant dense<0.000000e+00> : vector<8xf32>
    %181 = vector.multi_reduction <add>, %176, %cst_105 [1] : vector<8x128xf32> to vector<8xf32>
    %182 = vector.shape_cast %181 : vector<8xf32> to vector<8x1xf32>
    %cst_106 = arith.constant 1.280000e+02 : f32
    %183 = vector.broadcast %cst_106 : f32 to vector<8x1xf32>
    %184 = arith.divf %182, %183 : vector<8x1xf32>
    %185 = vector.broadcast %184 : vector<8x1xf32> to vector<8x128xf32>
    %186 = arith.subf %176, %185 : vector<8x128xf32>
    %187 = arith.mulf %186, %186 : vector<8x128xf32>
    %cst_107 = arith.constant dense<0.000000e+00> : vector<8xf32>
    %188 = vector.multi_reduction <add>, %187, %cst_107 [1] : vector<8x128xf32> to vector<8xf32>
    %189 = vector.shape_cast %188 : vector<8xf32> to vector<8x1xf32>
    %cst_108 = arith.constant 1.280000e+02 : f32
    %190 = vector.broadcast %cst_108 : f32 to vector<8x1xf32>
    %191 = arith.divf %189, %190 : vector<8x1xf32>
    %192 = vector.broadcast %184 : vector<8x1xf32> to vector<8x128xf32>
    %193 = arith.subf %176, %192 : vector<8x128xf32>
    %cst_109 = arith.constant 9.99999974E-6 : f32
    %194 = vector.broadcast %cst_109 : f32 to vector<8x1xf32>
    %195 = arith.addf %191, %194 : vector<8x1xf32>
    %196 = math.rsqrt %195 : vector<8x1xf32>
    %197 = vector.broadcast %196 : vector<8x1xf32> to vector<8x128xf32>
    %198 = arith.mulf %193, %197 : vector<8x128xf32>
    %199 = vector.broadcast %178 : vector<1x128xf32> to vector<8x128xf32>
    %200 = arith.mulf %198, %199 : vector<8x128xf32>
    %201 = vector.broadcast %180 : vector<1x128xf32> to vector<8x128xf32>
    %202 = arith.addf %200, %201 : vector<8x128xf32>
    %203 = arith.addf %202, %0 : vector<8x128xf32>
    %cst_110 = arith.constant 0.000000e+00 : f32
    %204 = vector.broadcast %cst_110 : f32 to vector<8x128xf32>
    %205 = arith.maximumf %203, %204 : vector<8x128xf32>
    %c2_111 = arith.constant 2 : index
    %c0_112 = arith.constant 0 : index
    %c0_113 = arith.constant 0 : index
    %206 = vector.load %arg8[%c2_111, %c0_112, %c0_113] : memref<6x128x128xf32, #tpu.memory_space<vmem>>, vector<1x128x128xf32>
    %207 = vector.shape_cast %206 : vector<1x128x128xf32> to vector<128x128xf32>
    %cst_114 = arith.constant dense<0.000000e+00> : vector<8x128xf32>
    %208 = tpu.matmul %205, %207, %cst_114 {dimension_numbers = #tpu.dot_dimension_numbers<[1], [0], [0], [1], [0, 0, 1, 1], [], []>} : vector<8x128xf32>, vector<128x128xf32>, vector<8x128xf32> -> vector<8x128xf32>
    %c2_115 = arith.constant 2 : index
    %c0_116 = arith.constant 0 : index
    %c0_117 = arith.constant 0 : index
    %209 = vector.load %arg9[%c2_115, %c0_116, %c0_117] : memref<6x1x128xf32, #tpu.memory_space<vmem>>, vector<1x1x128xf32>
    %210 = vector.shape_cast %209 : vector<1x1x128xf32> to vector<1x128xf32>
    %211 = vector.broadcast %210 : vector<1x128xf32> to vector<8x128xf32>
    %212 = arith.addf %208, %211 : vector<8x128xf32>
    %c0_118 = arith.constant 0 : index
    %c256 = arith.constant 256 : index
    %213 = vector.load %arg10[%c0_118, %c256] : memref<8x768xf32, #tpu.memory_space<vmem>>, vector<8x128xf32>
    tpu.vector_store %arg10[%c0_118, %c256], %212 {strides = array<i32>} : memref<8x768xf32, #tpu.memory_space<vmem>>, vector<8x128xf32>,
    %c3 = arith.constant 3 : index
    %c0_119 = arith.constant 0 : index
    %c0_120 = arith.constant 0 : index
    %214 = vector.load %arg2[%c3, %c0_119, %c0_120] : memref<6x128x128xf32, #tpu.memory_space<vmem>>, vector<1x128x128xf32>
    %215 = vector.shape_cast %214 : vector<1x128x128xf32> to vector<128x128xf32>
    %cst_121 = arith.constant dense<0.000000e+00> : vector<8x128xf32>
    %216 = tpu.matmul %0, %215, %cst_121 {dimension_numbers = #tpu.dot_dimension_numbers<[1], [0], [0], [1], [0, 0, 1, 1], [], []>} : vector<8x128xf32>, vector<128x128xf32>, vector<8x128xf32> -> vector<8x128xf32>
    %c3_122 = arith.constant 3 : index
    %c0_123 = arith.constant 0 : index
    %c0_124 = arith.constant 0 : index
    %217 = vector.load %arg3[%c3_122, %c0_123, %c0_124] : memref<6x1x128xf32, #tpu.memory_space<vmem>>, vector<1x1x128xf32>
    %218 = vector.shape_cast %217 : vector<1x1x128xf32> to vector<1x128xf32>
    %c3_125 = arith.constant 3 : index
    %c0_126 = arith.constant 0 : index
    %c0_127 = arith.constant 0 : index
    %219 = vector.load %arg4[%c3_125, %c0_126, %c0_127] : memref<6x1x128xf32, #tpu.memory_space<vmem>>, vector<1x1x128xf32>
    %220 = vector.shape_cast %219 : vector<1x1x128xf32> to vector<1x128xf32>
    %cst_128 = arith.constant dense<0.000000e+00> : vector<8xf32>
    %221 = vector.multi_reduction <add>, %216, %cst_128 [1] : vector<8x128xf32> to vector<8xf32>
    %222 = vector.shape_cast %221 : vector<8xf32> to vector<8x1xf32>
    %cst_129 = arith.constant 1.280000e+02 : f32
    %223 = vector.broadcast %cst_129 : f32 to vector<8x1xf32>
    %224 = arith.divf %222, %223 : vector<8x1xf32>
    %225 = vector.broadcast %224 : vector<8x1xf32> to vector<8x128xf32>
    %226 = arith.subf %216, %225 : vector<8x128xf32>
    %227 = arith.mulf %226, %226 : vector<8x128xf32>
    %cst_130 = arith.constant dense<0.000000e+00> : vector<8xf32>
    %228 = vector.multi_reduction <add>, %227, %cst_130 [1] : vector<8x128xf32> to vector<8xf32>
    %229 = vector.shape_cast %228 : vector<8xf32> to vector<8x1xf32>
    %cst_131 = arith.constant 1.280000e+02 : f32
    %230 = vector.broadcast %cst_131 : f32 to vector<8x1xf32>
    %231 = arith.divf %229, %230 : vector<8x1xf32>
    %232 = vector.broadcast %224 : vector<8x1xf32> to vector<8x128xf32>
    %233 = arith.subf %216, %232 : vector<8x128xf32>
    %cst_132 = arith.constant 9.99999974E-6 : f32
    %234 = vector.broadcast %cst_132 : f32 to vector<8x1xf32>
    %235 = arith.addf %231, %234 : vector<8x1xf32>
    %236 = math.rsqrt %235 : vector<8x1xf32>
    %237 = vector.broadcast %236 : vector<8x1xf32> to vector<8x128xf32>
    %238 = arith.mulf %233, %237 : vector<8x128xf32>
    %239 = vector.broadcast %218 : vector<1x128xf32> to vector<8x128xf32>
    %240 = arith.mulf %238, %239 : vector<8x128xf32>
    %241 = vector.broadcast %220 : vector<1x128xf32> to vector<8x128xf32>
    %242 = arith.addf %240, %241 : vector<8x128xf32>
    %cst_133 = arith.constant 0.000000e+00 : f32
    %243 = vector.broadcast %cst_133 : f32 to vector<8x128xf32>
    %244 = arith.maximumf %242, %243 : vector<8x128xf32>
    %c3_134 = arith.constant 3 : index
    %c0_135 = arith.constant 0 : index
    %c0_136 = arith.constant 0 : index
    %245 = vector.load %arg5[%c3_134, %c0_135, %c0_136] : memref<6x128x128xf32, #tpu.memory_space<vmem>>, vector<1x128x128xf32>
    %246 = vector.shape_cast %245 : vector<1x128x128xf32> to vector<128x128xf32>
    %cst_137 = arith.constant dense<0.000000e+00> : vector<8x128xf32>
    %247 = tpu.matmul %244, %246, %cst_137 {dimension_numbers = #tpu.dot_dimension_numbers<[1], [0], [0], [1], [0, 0, 1, 1], [], []>} : vector<8x128xf32>, vector<128x128xf32>, vector<8x128xf32> -> vector<8x128xf32>
    %c3_138 = arith.constant 3 : index
    %c0_139 = arith.constant 0 : index
    %c0_140 = arith.constant 0 : index
    %248 = vector.load %arg6[%c3_138, %c0_139, %c0_140] : memref<6x1x128xf32, #tpu.memory_space<vmem>>, vector<1x1x128xf32>
    %249 = vector.shape_cast %248 : vector<1x1x128xf32> to vector<1x128xf32>
    %c3_141 = arith.constant 3 : index
    %c0_142 = arith.constant 0 : index
    %c0_143 = arith.constant 0 : index
    %250 = vector.load %arg7[%c3_141, %c0_142, %c0_143] : memref<6x1x128xf32, #tpu.memory_space<vmem>>, vector<1x1x128xf32>
    %251 = vector.shape_cast %250 : vector<1x1x128xf32> to vector<1x128xf32>
    %cst_144 = arith.constant dense<0.000000e+00> : vector<8xf32>
    %252 = vector.multi_reduction <add>, %247, %cst_144 [1] : vector<8x128xf32> to vector<8xf32>
    %253 = vector.shape_cast %252 : vector<8xf32> to vector<8x1xf32>
    %cst_145 = arith.constant 1.280000e+02 : f32
    %254 = vector.broadcast %cst_145 : f32 to vector<8x1xf32>
    %255 = arith.divf %253, %254 : vector<8x1xf32>
    %256 = vector.broadcast %255 : vector<8x1xf32> to vector<8x128xf32>
    %257 = arith.subf %247, %256 : vector<8x128xf32>
    %258 = arith.mulf %257, %257 : vector<8x128xf32>
    %cst_146 = arith.constant dense<0.000000e+00> : vector<8xf32>
    %259 = vector.multi_reduction <add>, %258, %cst_146 [1] : vector<8x128xf32> to vector<8xf32>
    %260 = vector.shape_cast %259 : vector<8xf32> to vector<8x1xf32>
    %cst_147 = arith.constant 1.280000e+02 : f32
    %261 = vector.broadcast %cst_147 : f32 to vector<8x1xf32>
    %262 = arith.divf %260, %261 : vector<8x1xf32>
    %263 = vector.broadcast %255 : vector<8x1xf32> to vector<8x128xf32>
    %264 = arith.subf %247, %263 : vector<8x128xf32>
    %cst_148 = arith.constant 9.99999974E-6 : f32
    %265 = vector.broadcast %cst_148 : f32 to vector<8x1xf32>
    %266 = arith.addf %262, %265 : vector<8x1xf32>
    %267 = math.rsqrt %266 : vector<8x1xf32>
    %268 = vector.broadcast %267 : vector<8x1xf32> to vector<8x128xf32>
    %269 = arith.mulf %264, %268 : vector<8x128xf32>
    %270 = vector.broadcast %249 : vector<1x128xf32> to vector<8x128xf32>
    %271 = arith.mulf %269, %270 : vector<8x128xf32>
    %272 = vector.broadcast %251 : vector<1x128xf32> to vector<8x128xf32>
    %273 = arith.addf %271, %272 : vector<8x128xf32>
    %274 = arith.addf %273, %0 : vector<8x128xf32>
    %cst_149 = arith.constant 0.000000e+00 : f32
    %275 = vector.broadcast %cst_149 : f32 to vector<8x128xf32>
    %276 = arith.maximumf %274, %275 : vector<8x128xf32>
    %c3_150 = arith.constant 3 : index
    %c0_151 = arith.constant 0 : index
    %c0_152 = arith.constant 0 : index
    %277 = vector.load %arg8[%c3_150, %c0_151, %c0_152] : memref<6x128x128xf32, #tpu.memory_space<vmem>>, vector<1x128x128xf32>
    %278 = vector.shape_cast %277 : vector<1x128x128xf32> to vector<128x128xf32>
    %cst_153 = arith.constant dense<0.000000e+00> : vector<8x128xf32>
    %279 = tpu.matmul %276, %278, %cst_153 {dimension_numbers = #tpu.dot_dimension_numbers<[1], [0], [0], [1], [0, 0, 1, 1], [], []>} : vector<8x128xf32>, vector<128x128xf32>, vector<8x128xf32> -> vector<8x128xf32>
    %c3_154 = arith.constant 3 : index
    %c0_155 = arith.constant 0 : index
    %c0_156 = arith.constant 0 : index
    %280 = vector.load %arg9[%c3_154, %c0_155, %c0_156] : memref<6x1x128xf32, #tpu.memory_space<vmem>>, vector<1x1x128xf32>
    %281 = vector.shape_cast %280 : vector<1x1x128xf32> to vector<1x128xf32>
    %282 = vector.broadcast %281 : vector<1x128xf32> to vector<8x128xf32>
    %283 = arith.addf %279, %282 : vector<8x128xf32>
    %c0_157 = arith.constant 0 : index
    %c384 = arith.constant 384 : index
    %284 = vector.load %arg10[%c0_157, %c384] : memref<8x768xf32, #tpu.memory_space<vmem>>, vector<8x128xf32>
    tpu.vector_store %arg10[%c0_157, %c384], %283 {strides = array<i32>} : memref<8x768xf32, #tpu.memory_space<vmem>>, vector<8x128xf32>,
    %c4 = arith.constant 4 : index
    %c0_158 = arith.constant 0 : index
    %c0_159 = arith.constant 0 : index
    %285 = vector.load %arg2[%c4, %c0_158, %c0_159] : memref<6x128x128xf32, #tpu.memory_space<vmem>>, vector<1x128x128xf32>
    %286 = vector.shape_cast %285 : vector<1x128x128xf32> to vector<128x128xf32>
    %cst_160 = arith.constant dense<0.000000e+00> : vector<8x128xf32>
    %287 = tpu.matmul %0, %286, %cst_160 {dimension_numbers = #tpu.dot_dimension_numbers<[1], [0], [0], [1], [0, 0, 1, 1], [], []>} : vector<8x128xf32>, vector<128x128xf32>, vector<8x128xf32> -> vector<8x128xf32>
    %c4_161 = arith.constant 4 : index
    %c0_162 = arith.constant 0 : index
    %c0_163 = arith.constant 0 : index
    %288 = vector.load %arg3[%c4_161, %c0_162, %c0_163] : memref<6x1x128xf32, #tpu.memory_space<vmem>>, vector<1x1x128xf32>
    %289 = vector.shape_cast %288 : vector<1x1x128xf32> to vector<1x128xf32>
    %c4_164 = arith.constant 4 : index
    %c0_165 = arith.constant 0 : index
    %c0_166 = arith.constant 0 : index
    %290 = vector.load %arg4[%c4_164, %c0_165, %c0_166] : memref<6x1x128xf32, #tpu.memory_space<vmem>>, vector<1x1x128xf32>
    %291 = vector.shape_cast %290 : vector<1x1x128xf32> to vector<1x128xf32>
    %cst_167 = arith.constant dense<0.000000e+00> : vector<8xf32>
    %292 = vector.multi_reduction <add>, %287, %cst_167 [1] : vector<8x128xf32> to vector<8xf32>
    %293 = vector.shape_cast %292 : vector<8xf32> to vector<8x1xf32>
    %cst_168 = arith.constant 1.280000e+02 : f32
    %294 = vector.broadcast %cst_168 : f32 to vector<8x1xf32>
    %295 = arith.divf %293, %294 : vector<8x1xf32>
    %296 = vector.broadcast %295 : vector<8x1xf32> to vector<8x128xf32>
    %297 = arith.subf %287, %296 : vector<8x128xf32>
    %298 = arith.mulf %297, %297 : vector<8x128xf32>
    %cst_169 = arith.constant dense<0.000000e+00> : vector<8xf32>
    %299 = vector.multi_reduction <add>, %298, %cst_169 [1] : vector<8x128xf32> to vector<8xf32>
    %300 = vector.shape_cast %299 : vector<8xf32> to vector<8x1xf32>
    %cst_170 = arith.constant 1.280000e+02 : f32
    %301 = vector.broadcast %cst_170 : f32 to vector<8x1xf32>
    %302 = arith.divf %300, %301 : vector<8x1xf32>
    %303 = vector.broadcast %295 : vector<8x1xf32> to vector<8x128xf32>
    %304 = arith.subf %287, %303 : vector<8x128xf32>
    %cst_171 = arith.constant 9.99999974E-6 : f32
    %305 = vector.broadcast %cst_171 : f32 to vector<8x1xf32>
    %306 = arith.addf %302, %305 : vector<8x1xf32>
    %307 = math.rsqrt %306 : vector<8x1xf32>
    %308 = vector.broadcast %307 : vector<8x1xf32> to vector<8x128xf32>
    %309 = arith.mulf %304, %308 : vector<8x128xf32>
    %310 = vector.broadcast %289 : vector<1x128xf32> to vector<8x128xf32>
    %311 = arith.mulf %309, %310 : vector<8x128xf32>
    %312 = vector.broadcast %291 : vector<1x128xf32> to vector<8x128xf32>
    %313 = arith.addf %311, %312 : vector<8x128xf32>
    %cst_172 = arith.constant 0.000000e+00 : f32
    %314 = vector.broadcast %cst_172 : f32 to vector<8x128xf32>
    %315 = arith.maximumf %313, %314 : vector<8x128xf32>
    %c4_173 = arith.constant 4 : index
    %c0_174 = arith.constant 0 : index
    %c0_175 = arith.constant 0 : index
    %316 = vector.load %arg5[%c4_173, %c0_174, %c0_175] : memref<6x128x128xf32, #tpu.memory_space<vmem>>, vector<1x128x128xf32>
    %317 = vector.shape_cast %316 : vector<1x128x128xf32> to vector<128x128xf32>
    %cst_176 = arith.constant dense<0.000000e+00> : vector<8x128xf32>
    %318 = tpu.matmul %315, %317, %cst_176 {dimension_numbers = #tpu.dot_dimension_numbers<[1], [0], [0], [1], [0, 0, 1, 1], [], []>} : vector<8x128xf32>, vector<128x128xf32>, vector<8x128xf32> -> vector<8x128xf32>
    %c4_177 = arith.constant 4 : index
    %c0_178 = arith.constant 0 : index
    %c0_179 = arith.constant 0 : index
    %319 = vector.load %arg6[%c4_177, %c0_178, %c0_179] : memref<6x1x128xf32, #tpu.memory_space<vmem>>, vector<1x1x128xf32>
    %320 = vector.shape_cast %319 : vector<1x1x128xf32> to vector<1x128xf32>
    %c4_180 = arith.constant 4 : index
    %c0_181 = arith.constant 0 : index
    %c0_182 = arith.constant 0 : index
    %321 = vector.load %arg7[%c4_180, %c0_181, %c0_182] : memref<6x1x128xf32, #tpu.memory_space<vmem>>, vector<1x1x128xf32>
    %322 = vector.shape_cast %321 : vector<1x1x128xf32> to vector<1x128xf32>
    %cst_183 = arith.constant dense<0.000000e+00> : vector<8xf32>
    %323 = vector.multi_reduction <add>, %318, %cst_183 [1] : vector<8x128xf32> to vector<8xf32>
    %324 = vector.shape_cast %323 : vector<8xf32> to vector<8x1xf32>
    %cst_184 = arith.constant 1.280000e+02 : f32
    %325 = vector.broadcast %cst_184 : f32 to vector<8x1xf32>
    %326 = arith.divf %324, %325 : vector<8x1xf32>
    %327 = vector.broadcast %326 : vector<8x1xf32> to vector<8x128xf32>
    %328 = arith.subf %318, %327 : vector<8x128xf32>
    %329 = arith.mulf %328, %328 : vector<8x128xf32>
    %cst_185 = arith.constant dense<0.000000e+00> : vector<8xf32>
    %330 = vector.multi_reduction <add>, %329, %cst_185 [1] : vector<8x128xf32> to vector<8xf32>
    %331 = vector.shape_cast %330 : vector<8xf32> to vector<8x1xf32>
    %cst_186 = arith.constant 1.280000e+02 : f32
    %332 = vector.broadcast %cst_186 : f32 to vector<8x1xf32>
    %333 = arith.divf %331, %332 : vector<8x1xf32>
    %334 = vector.broadcast %326 : vector<8x1xf32> to vector<8x128xf32>
    %335 = arith.subf %318, %334 : vector<8x128xf32>
    %cst_187 = arith.constant 9.99999974E-6 : f32
    %336 = vector.broadcast %cst_187 : f32 to vector<8x1xf32>
    %337 = arith.addf %333, %336 : vector<8x1xf32>
    %338 = math.rsqrt %337 : vector<8x1xf32>
    %339 = vector.broadcast %338 : vector<8x1xf32> to vector<8x128xf32>
    %340 = arith.mulf %335, %339 : vector<8x128xf32>
    %341 = vector.broadcast %320 : vector<1x128xf32> to vector<8x128xf32>
    %342 = arith.mulf %340, %341 : vector<8x128xf32>
    %343 = vector.broadcast %322 : vector<1x128xf32> to vector<8x128xf32>
    %344 = arith.addf %342, %343 : vector<8x128xf32>
    %345 = arith.addf %344, %0 : vector<8x128xf32>
    %cst_188 = arith.constant 0.000000e+00 : f32
    %346 = vector.broadcast %cst_188 : f32 to vector<8x128xf32>
    %347 = arith.maximumf %345, %346 : vector<8x128xf32>
    %c4_189 = arith.constant 4 : index
    %c0_190 = arith.constant 0 : index
    %c0_191 = arith.constant 0 : index
    %348 = vector.load %arg8[%c4_189, %c0_190, %c0_191] : memref<6x128x128xf32, #tpu.memory_space<vmem>>, vector<1x128x128xf32>
    %349 = vector.shape_cast %348 : vector<1x128x128xf32> to vector<128x128xf32>
    %cst_192 = arith.constant dense<0.000000e+00> : vector<8x128xf32>
    %350 = tpu.matmul %347, %349, %cst_192 {dimension_numbers = #tpu.dot_dimension_numbers<[1], [0], [0], [1], [0, 0, 1, 1], [], []>} : vector<8x128xf32>, vector<128x128xf32>, vector<8x128xf32> -> vector<8x128xf32>
    %c4_193 = arith.constant 4 : index
    %c0_194 = arith.constant 0 : index
    %c0_195 = arith.constant 0 : index
    %351 = vector.load %arg9[%c4_193, %c0_194, %c0_195] : memref<6x1x128xf32, #tpu.memory_space<vmem>>, vector<1x1x128xf32>
    %352 = vector.shape_cast %351 : vector<1x1x128xf32> to vector<1x128xf32>
    %353 = vector.broadcast %352 : vector<1x128xf32> to vector<8x128xf32>
    %354 = arith.addf %350, %353 : vector<8x128xf32>
    %c0_196 = arith.constant 0 : index
    %c512 = arith.constant 512 : index
    %355 = vector.load %arg10[%c0_196, %c512] : memref<8x768xf32, #tpu.memory_space<vmem>>, vector<8x128xf32>
    tpu.vector_store %arg10[%c0_196, %c512], %354 {strides = array<i32>} : memref<8x768xf32, #tpu.memory_space<vmem>>, vector<8x128xf32>,
    %c5 = arith.constant 5 : index
    %c0_197 = arith.constant 0 : index
    %c0_198 = arith.constant 0 : index
    %356 = vector.load %arg2[%c5, %c0_197, %c0_198] : memref<6x128x128xf32, #tpu.memory_space<vmem>>, vector<1x128x128xf32>
    %357 = vector.shape_cast %356 : vector<1x128x128xf32> to vector<128x128xf32>
    %cst_199 = arith.constant dense<0.000000e+00> : vector<8x128xf32>
    %358 = tpu.matmul %0, %357, %cst_199 {dimension_numbers = #tpu.dot_dimension_numbers<[1], [0], [0], [1], [0, 0, 1, 1], [], []>} : vector<8x128xf32>, vector<128x128xf32>, vector<8x128xf32> -> vector<8x128xf32>
    %c5_200 = arith.constant 5 : index
    %c0_201 = arith.constant 0 : index
    %c0_202 = arith.constant 0 : index
    %359 = vector.load %arg3[%c5_200, %c0_201, %c0_202] : memref<6x1x128xf32, #tpu.memory_space<vmem>>, vector<1x1x128xf32>
    %360 = vector.shape_cast %359 : vector<1x1x128xf32> to vector<1x128xf32>
    %c5_203 = arith.constant 5 : index
    %c0_204 = arith.constant 0 : index
    %c0_205 = arith.constant 0 : index
    %361 = vector.load %arg4[%c5_203, %c0_204, %c0_205] : memref<6x1x128xf32, #tpu.memory_space<vmem>>, vector<1x1x128xf32>
    %362 = vector.shape_cast %361 : vector<1x1x128xf32> to vector<1x128xf32>
    %cst_206 = arith.constant dense<0.000000e+00> : vector<8xf32>
    %363 = vector.multi_reduction <add>, %358, %cst_206 [1] : vector<8x128xf32> to vector<8xf32>
    %364 = vector.shape_cast %363 : vector<8xf32> to vector<8x1xf32>
    %cst_207 = arith.constant 1.280000e+02 : f32
    %365 = vector.broadcast %cst_207 : f32 to vector<8x1xf32>
    %366 = arith.divf %364, %365 : vector<8x1xf32>
    %367 = vector.broadcast %366 : vector<8x1xf32> to vector<8x128xf32>
    %368 = arith.subf %358, %367 : vector<8x128xf32>
    %369 = arith.mulf %368, %368 : vector<8x128xf32>
    %cst_208 = arith.constant dense<0.000000e+00> : vector<8xf32>
    %370 = vector.multi_reduction <add>, %369, %cst_208 [1] : vector<8x128xf32> to vector<8xf32>
    %371 = vector.shape_cast %370 : vector<8xf32> to vector<8x1xf32>
    %cst_209 = arith.constant 1.280000e+02 : f32
    %372 = vector.broadcast %cst_209 : f32 to vector<8x1xf32>
    %373 = arith.divf %371, %372 : vector<8x1xf32>
    %374 = vector.broadcast %366 : vector<8x1xf32> to vector<8x128xf32>
    %375 = arith.subf %358, %374 : vector<8x128xf32>
    %cst_210 = arith.constant 9.99999974E-6 : f32
    %376 = vector.broadcast %cst_210 : f32 to vector<8x1xf32>
    %377 = arith.addf %373, %376 : vector<8x1xf32>
    %378 = math.rsqrt %377 : vector<8x1xf32>
    %379 = vector.broadcast %378 : vector<8x1xf32> to vector<8x128xf32>
    %380 = arith.mulf %375, %379 : vector<8x128xf32>
    %381 = vector.broadcast %360 : vector<1x128xf32> to vector<8x128xf32>
    %382 = arith.mulf %380, %381 : vector<8x128xf32>
    %383 = vector.broadcast %362 : vector<1x128xf32> to vector<8x128xf32>
    %384 = arith.addf %382, %383 : vector<8x128xf32>
    %cst_211 = arith.constant 0.000000e+00 : f32
    %385 = vector.broadcast %cst_211 : f32 to vector<8x128xf32>
    %386 = arith.maximumf %384, %385 : vector<8x128xf32>
    %c5_212 = arith.constant 5 : index
    %c0_213 = arith.constant 0 : index
    %c0_214 = arith.constant 0 : index
    %387 = vector.load %arg5[%c5_212, %c0_213, %c0_214] : memref<6x128x128xf32, #tpu.memory_space<vmem>>, vector<1x128x128xf32>
    %388 = vector.shape_cast %387 : vector<1x128x128xf32> to vector<128x128xf32>
    %cst_215 = arith.constant dense<0.000000e+00> : vector<8x128xf32>
    %389 = tpu.matmul %386, %388, %cst_215 {dimension_numbers = #tpu.dot_dimension_numbers<[1], [0], [0], [1], [0, 0, 1, 1], [], []>} : vector<8x128xf32>, vector<128x128xf32>, vector<8x128xf32> -> vector<8x128xf32>
    %c5_216 = arith.constant 5 : index
    %c0_217 = arith.constant 0 : index
    %c0_218 = arith.constant 0 : index
    %390 = vector.load %arg6[%c5_216, %c0_217, %c0_218] : memref<6x1x128xf32, #tpu.memory_space<vmem>>, vector<1x1x128xf32>
    %391 = vector.shape_cast %390 : vector<1x1x128xf32> to vector<1x128xf32>
    %c5_219 = arith.constant 5 : index
    %c0_220 = arith.constant 0 : index
    %c0_221 = arith.constant 0 : index
    %392 = vector.load %arg7[%c5_219, %c0_220, %c0_221] : memref<6x1x128xf32, #tpu.memory_space<vmem>>, vector<1x1x128xf32>
    %393 = vector.shape_cast %392 : vector<1x1x128xf32> to vector<1x128xf32>
    %cst_222 = arith.constant dense<0.000000e+00> : vector<8xf32>
    %394 = vector.multi_reduction <add>, %389, %cst_222 [1] : vector<8x128xf32> to vector<8xf32>
    %395 = vector.shape_cast %394 : vector<8xf32> to vector<8x1xf32>
    %cst_223 = arith.constant 1.280000e+02 : f32
    %396 = vector.broadcast %cst_223 : f32 to vector<8x1xf32>
    %397 = arith.divf %395, %396 : vector<8x1xf32>
    %398 = vector.broadcast %397 : vector<8x1xf32> to vector<8x128xf32>
    %399 = arith.subf %389, %398 : vector<8x128xf32>
    %400 = arith.mulf %399, %399 : vector<8x128xf32>
    %cst_224 = arith.constant dense<0.000000e+00> : vector<8xf32>
    %401 = vector.multi_reduction <add>, %400, %cst_224 [1] : vector<8x128xf32> to vector<8xf32>
    %402 = vector.shape_cast %401 : vector<8xf32> to vector<8x1xf32>
    %cst_225 = arith.constant 1.280000e+02 : f32
    %403 = vector.broadcast %cst_225 : f32 to vector<8x1xf32>
    %404 = arith.divf %402, %403 : vector<8x1xf32>
    %405 = vector.broadcast %397 : vector<8x1xf32> to vector<8x128xf32>
    %406 = arith.subf %389, %405 : vector<8x128xf32>
    %cst_226 = arith.constant 9.99999974E-6 : f32
    %407 = vector.broadcast %cst_226 : f32 to vector<8x1xf32>
    %408 = arith.addf %404, %407 : vector<8x1xf32>
    %409 = math.rsqrt %408 : vector<8x1xf32>
    %410 = vector.broadcast %409 : vector<8x1xf32> to vector<8x128xf32>
    %411 = arith.mulf %406, %410 : vector<8x128xf32>
    %412 = vector.broadcast %391 : vector<1x128xf32> to vector<8x128xf32>
    %413 = arith.mulf %411, %412 : vector<8x128xf32>
    %414 = vector.broadcast %393 : vector<1x128xf32> to vector<8x128xf32>
    %415 = arith.addf %413, %414 : vector<8x128xf32>
    %416 = arith.addf %415, %0 : vector<8x128xf32>
    %cst_227 = arith.constant 0.000000e+00 : f32
    %417 = vector.broadcast %cst_227 : f32 to vector<8x128xf32>
    %418 = arith.maximumf %416, %417 : vector<8x128xf32>
    %c5_228 = arith.constant 5 : index
    %c0_229 = arith.constant 0 : index
    %c0_230 = arith.constant 0 : index
    %419 = vector.load %arg8[%c5_228, %c0_229, %c0_230] : memref<6x128x128xf32, #tpu.memory_space<vmem>>, vector<1x128x128xf32>
    %420 = vector.shape_cast %419 : vector<1x128x128xf32> to vector<128x128xf32>
    %cst_231 = arith.constant dense<0.000000e+00> : vector<8x128xf32>
    %421 = tpu.matmul %418, %420, %cst_231 {dimension_numbers = #tpu.dot_dimension_numbers<[1], [0], [0], [1], [0, 0, 1, 1], [], []>} : vector<8x128xf32>, vector<128x128xf32>, vector<8x128xf32> -> vector<8x128xf32>
    %c5_232 = arith.constant 5 : index
    %c0_233 = arith.constant 0 : index
    %c0_234 = arith.constant 0 : index
    %422 = vector.load %arg9[%c5_232, %c0_233, %c0_234] : memref<6x1x128xf32, #tpu.memory_space<vmem>>, vector<1x1x128xf32>
    %423 = vector.shape_cast %422 : vector<1x1x128xf32> to vector<1x128xf32>
    %424 = vector.broadcast %423 : vector<1x128xf32> to vector<8x128xf32>
    %425 = arith.addf %421, %424 : vector<8x128xf32>
    %c0_235 = arith.constant 0 : index
    %c640 = arith.constant 640 : index
    %426 = vector.load %arg10[%c0_235, %c640] : memref<8x768xf32, #tpu.memory_space<vmem>>, vector<8x128xf32>
    tpu.vector_store %arg10[%c0_235, %c640], %425 {strides = array<i32>} : memref<8x768xf32, #tpu.memory_space<vmem>>, vector<8x128xf32>,
    return
  }
  func.func @transform_0(%arg0: i32) -> (i32, i32) {
    %c0_i32 = arith.constant 0 : i32
    %c0_i32_0 = arith.constant 0 : i32
    return %arg0, %c0_i32 : i32, i32
  }
  func.func @transform_1(%arg0: i32) -> (i32, i32, i32) {
    %c0_i32 = arith.constant 0 : i32
    %c0_i32_0 = arith.constant 0 : i32
    %c0_i32_1 = arith.constant 0 : i32
    %c0_i32_2 = arith.constant 0 : i32
    return %c0_i32, %c0_i32_0, %c0_i32_1 : i32, i32, i32
  }
  func.func @transform_2(%arg0: i32) -> (i32, i32, i32) {
    %c0_i32 = arith.constant 0 : i32
    %c0_i32_0 = arith.constant 0 : i32
    %c0_i32_1 = arith.constant 0 : i32
    %c0_i32_2 = arith.constant 0 : i32
    return %c0_i32, %c0_i32_0, %c0_i32_1 : i32, i32, i32
  }
  func.func @transform_3(%arg0: i32) -> (i32, i32, i32) {
    %c0_i32 = arith.constant 0 : i32
    %c0_i32_0 = arith.constant 0 : i32
    %c0_i32_1 = arith.constant 0 : i32
    %c0_i32_2 = arith.constant 0 : i32
    return %c0_i32, %c0_i32_0, %c0_i32_1 : i32, i32, i32
  }
  func.func @transform_4(%arg0: i32) -> (i32, i32, i32) {
    %c0_i32 = arith.constant 0 : i32
    %c0_i32_0 = arith.constant 0 : i32
    %c0_i32_1 = arith.constant 0 : i32
    %c0_i32_2 = arith.constant 0 : i32
    return %c0_i32, %c0_i32_0, %c0_i32_1 : i32, i32, i32
  }
  func.func @transform_5(%arg0: i32) -> (i32, i32, i32) {
    %c0_i32 = arith.constant 0 : i32
    %c0_i32_0 = arith.constant 0 : i32
    %c0_i32_1 = arith.constant 0 : i32
    %c0_i32_2 = arith.constant 0 : i32
    return %c0_i32, %c0_i32_0, %c0_i32_1 : i32, i32, i32
  }
  func.func @transform_6(%arg0: i32) -> (i32, i32, i32) {
    %c0_i32 = arith.constant 0 : i32
    %c0_i32_0 = arith.constant 0 : i32
    %c0_i32_1 = arith.constant 0 : i32
    %c0_i32_2 = arith.constant 0 : i32
    return %c0_i32, %c0_i32_0, %c0_i32_1 : i32, i32, i32
  }
  func.func @transform_7(%arg0: i32) -> (i32, i32, i32) {
    %c0_i32 = arith.constant 0 : i32
    %c0_i32_0 = arith.constant 0 : i32
    %c0_i32_1 = arith.constant 0 : i32
    %c0_i32_2 = arith.constant 0 : i32
    return %c0_i32, %c0_i32_0, %c0_i32_1 : i32, i32, i32
  }
  func.func @transform_8(%arg0: i32) -> (i32, i32, i32) {
    %c0_i32 = arith.constant 0 : i32
    %c0_i32_0 = arith.constant 0 : i32
    %c0_i32_1 = arith.constant 0 : i32
    %c0_i32_2 = arith.constant 0 : i32
    return %c0_i32, %c0_i32_0, %c0_i32_1 : i32, i32, i32
  }
  func.func @transform_9(%arg0: i32) -> (i32, i32) {
    %c0_i32 = arith.constant 0 : i32
    %c0_i32_0 = arith.constant 0 : i32
    return %arg0, %c0_i32 : i32, i32
  }
}

</mosaic_0001>

<bundles_post_ra>
// kernel: tpu_custom_call.1
= control target key start
LH: loop header
LB: loop body
LE: loop exit
PB: predicated region body
PF: predicated region fallthrough
CT: control target
= control target key end

     0   :  { %14 = vsyncpa [#allocation3], 0  ;;  %s3816_s0 = inlined_call_operand.hbm [shape: f32[8,128], index: 0, kind: input, shape index: {}]   ;;  %s3817_s1 = inlined_call_operand.hbm [shape: f32[6,128,128], index: 1, kind: input, shape index: {}]   ;;  %s3818_s2 = inlined_call_operand.hbm [shape: f32[6,1,128], index: 2, kind: input, shape index: {}]   ;;  %s3819_s3 = inlined_call_operand.hbm [shape: f32[6,1,128], index: 3, kind: input, shape index: {}]   ;;  %s3820_s4 = inlined_call_operand.hbm [shape: f32[6,128,128], index: 4, kind: input, shape index: {}]   ;;  %s3821_s5 = inlined_call_operand.vmem [shape: f32[6,1,128], index: 5, kind: input, shape index: {}]   ;;  %s3822_s6 = inlined_call_operand.hbm [shape: f32[6,1,128], index: 6, kind: input, shape index: {}]   ;;  %s3823_s7 = inlined_call_operand.hbm [shape: f32[6,128,128], index: 7, kind: input, shape index: {}]   ;;  %s3824_s8 = inlined_call_operand.vmem [shape: f32[6,1,128], index: 8, kind: input, shape index: {}]   ;;  %s3825_s9 = inlined_call_operand.hbm [shape: f32[8,768], index: 9, kind: output, shape index: {}]  }
   0x1   :  { %15 = vsyncpa [#allocation6], 0 }
   0x2   :  { %16 = vsyncpa [#allocation9], 0 }
   0x3   :  { %17 = vsyncpa [#allocation12], 0 }
   0x4   :  { %18 = vsyncpa [#allocation4], 0  ;;  %s3310_s30 = smov [#allocation5]  }
   0x5   :  { %s34_s10 = sshll.u32 %s3310_s30, 4  ;;  %s35_s10 = int_to_ptr.vmem [resolvable:$true] %s34_s10 }
   0x6   :  { %s3148_s11 = scalar_lea.vmem %s35_s10, 12288  ;;  %p3153_p1 = scmp.lt.s32.totalorder %s35_s10, %s35_s10 }
   0x7   :  { %p3149_p0 = scmp.ne.s32.totalorder %s35_s10, %s3148_s11  ;;  %p3154_p2 = scmp.lt.s32.totalorder %s3148_s11, %s3148_s11 }
   0x9   :  { %p3155_p3 = por %p3154_p2, %p3153_p1 }
   0xb   :  { %p3156_p4 = pnand %p3155_p3, %p3149_p0 }
   0xd   :  { %3159 = shalt.err (!%p3156_p4)
}
   0xe   :  { %s3311_s12 = smov 128   ;;  %s3312_s13 = smov 8  }
   0xf   :  { %40 = dma.hbm_to_vmem [thread:$0]  %s3817_s1, 12288, %s35_s10, [#allocation6], %s3311_s12, %s3311_s12, %s3312_s13  }
  0x10   :  { %s3313_s16 = smov [#allocation8]   ;;  %s3314_s18 = smov [#allocation11]  }
  0x11   :  { %s58_s17 = sshll.u32 %s3313_s16, 4  ;;  %s84_s19 = sshll.u32 %s3314_s18, 4  ;;  %s59_s17 = int_to_ptr.vmem [resolvable:$true] %s58_s17  ;;  %s85_s19 = int_to_ptr.vmem [resolvable:$true] %s84_s19 }
  0x12   :  { %s3168_s20 = scalar_lea.vmem %s59_s17, 96  ;;  %p3173_p6 = scmp.lt.s32.totalorder %s59_s17, %s59_s17 }
  0x13   :  { %p3169_p5 = scmp.ne.s32.totalorder %s59_s17, %s3168_s20  ;;  %p3174_p7 = scmp.lt.s32.totalorder %s3168_s20, %s3168_s20 }
  0x15   :  { %p3175_p8 = por %p3174_p7, %p3173_p6 }
  0x17   :  { %p3176_p9 = pnand %p3175_p8, %p3169_p5 }
  0x19   :  { %3179 = shalt.err (!%p3176_p9)
}
  0x1a   :  { %s3315_s21 = smov 16   ;;  %s3316_s22 = smov 1  }
  0x1b   :  { %64 = dma.hbm_to_vmem [thread:$0]  %s3819_s3, 96, %s59_s17, [#allocation9], %s3315_s21, %s3315_s21, %s3316_s22  }
  0x1c   :  { %s3188_s1 = scalar_lea.vmem %s85_s19, 96  ;;  %p3193_p11 = scmp.lt.s32.totalorder %s85_s19, %s85_s19 }
  0x1d   :  { %p3189_p10 = scmp.ne.s32.totalorder %s85_s19, %s3188_s1  ;;  %p3194_p12 = scmp.lt.s32.totalorder %s3188_s1, %s3188_s1 }
  0x1f   :  { %p3195_p13 = por %p3194_p12, %p3193_p11 }
  0x21   :  { %p3196_p0 = pnand %p3195_p13, %p3189_p10 }
  0x23   :  { %3199 = shalt.err (!%p3196_p0)
}
  0x24   :  { %90 = dma.hbm_to_vmem [thread:$0]  %s3822_s6, 96, %s85_s19, [#allocation12], %s3315_s21, %s3315_s21, %s3316_s22  }
  0x25   :  { %s3317_s27 = smov [#allocation2]   ;;  %s3318_s29 = smov [#allocation7]  }
  0x26   :  { %s25_s28 = sshll.u32 %s3317_s27, 4  ;;  %s46_s3 = sshll.u32 %s3318_s29, 4  ;;  %s26_s28 = int_to_ptr.vmem [resolvable:$true] %s25_s28  ;;  %s47_s3 = int_to_ptr.vmem [resolvable:$true] %s46_s3 }
  0x27   :  { %s3208_s30 = scalar_lea.vmem %s26_s28, 128  ;;  %p3213_p2 = scmp.lt.s32.totalorder %s26_s28, %s26_s28 }
  0x28   :  { %p3209_p1 = scmp.ne.s32.totalorder %s26_s28, %s3208_s30  ;;  %p3214_p3 = scmp.lt.s32.totalorder %s3208_s30, %s3208_s30 }
  0x2a   :  { %p3215_p4 = por %p3214_p3, %p3213_p2 }
  0x2c   :  { %p3216_p5 = pnand %p3215_p4, %p3209_p1 }
  0x2e   :  { %3219 = shalt.err (!%p3216_p5)
}
  0x2f   :  { %28 = dma.hbm_to_vmem [thread:$0]  %s3816_s0, 128, %s26_s28, [#allocation3]  }
  0x30   :  { %s3228_s14 = scalar_lea.vmem %s47_s3, 96  ;;  %p3233_p7 = scmp.lt.s32.totalorder %s47_s3, %s47_s3 }
  0x31   :  { %p3229_p6 = scmp.ne.s32.totalorder %s47_s3, %s3228_s14  ;;  %p3234_p8 = scmp.lt.s32.totalorder %s3228_s14, %s3228_s14 }
  0x33   :  { %p3235_p9 = por %p3234_p8, %p3233_p7 }
  0x35   :  { %p3236_p10 = pnand %p3235_p9, %p3229_p6 }
  0x37   :  { %3239 = shalt.err (!%p3236_p10)
}
  0x38   :  { %52 = dma.hbm_to_vmem [thread:$0]  %s3818_s2, 96, %s47_s3, [#allocation6], %s3315_s21, %s3315_s21, %s3316_s22  }
  0x39   :  { %s3319_s16 = smov [#allocation10]   ;;  %s3320_s18 = smov [#allocation13]  }
  0x3a   :  { %s70_s17 = sshll.u32 %s3319_s16, 4  ;;  %s96_s0 = sshll.u32 %s3320_s18, 4  ;;  %s71_s17 = int_to_ptr.vmem [resolvable:$true] %s70_s17  ;;  %s97_s0 = int_to_ptr.vmem [resolvable:$true] %s96_s0 }
  0x3b   :  { %s3248_s19 = scalar_lea.vmem %s71_s17, 12288  ;;  %p3253_p12 = scmp.lt.s32.totalorder %s71_s17, %s71_s17 }
  0x3c   :  { %p3249_p11 = scmp.ne.s32.totalorder %s71_s17, %s3248_s19  ;;  %p3254_p13 = scmp.lt.s32.totalorder %s3248_s19, %s3248_s19 }
  0x3e   :  { %p3255_p0 = por %p3254_p13, %p3253_p12 }
  0x40   :  { %p3256_p1 = pnand %p3255_p0, %p3249_p11 }
  0x42   :  { %3259 = shalt.err (!%p3256_p1)
}
  0x43   :  { %76 = dma.hbm_to_vmem [thread:$0]  %s3820_s4, 12288, %s71_s17, [#allocation9], %s3311_s12, %s3311_s12, %s3312_s13  }
  0x44   :  { %s3268_s2 = scalar_lea.vmem %s97_s0, 12288  ;;  %p3273_p3 = scmp.lt.s32.totalorder %s97_s0, %s97_s0 }
  0x45   :  { %p3269_p2 = scmp.ne.s32.totalorder %s97_s0, %s3268_s2  ;;  %p3274_p4 = scmp.lt.s32.totalorder %s3268_s2, %s3268_s2 }
  0x47   :  { %p3275_p5 = por %p3274_p4, %p3273_p3 }
  0x49   :  { %p3276_p6 = pnand %p3275_p5, %p3269_p2 }
  0x4b   :  { %3279 = shalt.err (!%p3276_p6)
}
  0x4c   :  { %102 = dma.hbm_to_vmem [thread:$0]  %s3823_s7, 12288, %s97_s0, [#allocation12], %s3311_s12, %s3311_s12, %s3312_s13  }
  0x4d   :  { %3300 = dma.done.wait [#allocation3], 128  }
  0x4e   :  { %3301 = vsyncadd [#allocation3], 4294967168 }
  0x4f   :  { %3302 = dma.done.wait [#allocation6], 12384  }
  0x50   :  { %3303 = vsyncadd [#allocation6], 4294954912 }
  0x51   :  { %3304 = dma.done.wait [#allocation9], 12384  }
  0x52   :  { %3305 = vsyncadd [#allocation9], 4294954912 }
  0x53   :  { %3306 = dma.done.wait [#allocation12], 12384  }
  0x54   :  { %3307 = vsyncadd [#allocation12], 4294954912  ;;  %v3321_v0 = vmov 0.0   ;;  %vm3322_vm0 = vmmov 0   ;;  %v142_v1 = vld [vmem:[#allocation5 + $0x78] sm:$0xff]  ;;  %v141_v2 = vld [vmem:[#allocation5 + $0x70] sm:$0xff] }
  0x55   :  { %2470 = vmatprep.subr.mxu0 %v3321_v0  ;;  %2502 = vmatprep.mubr.msk.f32.mxu0 %vm3322_vm0, %v3321_v0  ;;  %v140_v3 = vld [vmem:[#allocation5 + $0x68] sm:$0xff]  ;;  %v139_v4 = vld [vmem:[#allocation5 + $0x60] sm:$0xff]  ;;  %v138_v5 = vld [vmem:[#allocation5 + $0x58] sm:$0xff]  ;;  %s3323_s23 = smov [#allocation14]  }
  0x56   :  { %2505 = vmatprep.subr.mxu1 %v3321_v0  ;;  %2537 = vmatprep.mubr.msk.f32.mxu1 %vm3322_vm0, %v3321_v0  ;;  %v137_v6 = vld [vmem:[#allocation5 + $0x50] sm:$0xff]  ;;  %v136_v7 = vld [vmem:[#allocation5 + $0x48] sm:$0xff]  ;;  %v135_v8 = vld [vmem:[#allocation5 + $0x40] sm:$0xff]  ;;  %s2112_s2 = sshll.u32 %s3323_s23, 4  ;;  %s2113_s2 = int_to_ptr.vmem [resolvable:$true] %s2112_s2 }
  0x57   :  { %2471 = vmatpush3.msra.mxu0 %v142_v1  ;;  %v134_v9 = vld [vmem:[#allocation5 + $0x38] sm:$0xff]  ;;  %v133_v10 = vld [vmem:[#allocation5 + $0x30] sm:$0xff]  ;;  %v132_v11 = vld [vmem:[#allocation5 + $0x28] sm:$0xff]  ;;  %p3285_p8 = scmp.lt.s32.totalorder %s2113_s2, %s2113_s2 }
  0x58   :  { %2472 = vmatprep.subr.mxu0 %v3321_v0  ;;  %v131_v12 = vld [vmem:[#allocation5 + $0x20] sm:$0xff]  ;;  %v130_v13 = vld [vmem:[#allocation5 + $0x18] sm:$0xff]  ;;  %v129_v14 = vld [vmem:[#allocation5 + $0x10] sm:$0xff] }
  0x59   :  { %2473 = vmatpush3.msra.mxu0 %v141_v2  ;;  %v128_v15 = vld [vmem:[#allocation5 + $0x8] sm:$0xff]  ;;  %v127_v16 = vld [vmem:[#allocation5] sm:$0xff]  ;;  %v3433_v17 = vld [vmem:[#allocation2] sm:$0xff] }
  0x5a   :  { %2474 = vmatprep.subr.mxu0 %v3321_v0  ;;  %v257_v20 = vld [vmem:[#allocation10 + $0x78] sm:$0xff]  ;;  %v256_v21 = vld [vmem:[#allocation10 + $0x70] sm:$0xff]  ;;  %v255_v22 = vld [vmem:[#allocation10 + $0x68] sm:$0xff] }
  0x5b   :  { %2475 = vmatpush3.msra.mxu0 %v140_v3  ;;  %2506 = vmatpush3.msra.mxu1 %v257_v20  ;;  %v254_v27 = vld [vmem:[#allocation10 + $0x60] sm:$0xff]  ;;  %v253_v28 = vld [vmem:[#allocation10 + $0x58] sm:$0xff]  ;;  %v252_v29 = vld [vmem:[#allocation10 + $0x50] sm:$0xff] }
  0x5c   :  { %2476 = vmatprep.subr.mxu0 %v3321_v0  ;;  %2507 = vmatprep.subr.mxu1 %v3321_v0  ;;  %v251_v30 = vld [vmem:[#allocation10 + $0x48] sm:$0xff]  ;;  %v250_v31 = vld [vmem:[#allocation10 + $0x40] sm:$0xff]  ;;  %v249_v32 = vld [vmem:[#allocation10 + $0x38] sm:$0xff] }
  0x5d   :  { %2477 = vmatpush3.msra.mxu0 %v139_v4  ;;  %2508 = vmatpush3.msra.mxu1 %v256_v21  ;;  %v248_v33 = vld [vmem:[#allocation10 + $0x30] sm:$0xff]  ;;  %v247_v34 = vld [vmem:[#allocation10 + $0x28] sm:$0xff]  ;;  %v246_v35 = vld [vmem:[#allocation10 + $0x20] sm:$0xff] }
  0x5e   :  { %2478 = vmatprep.subr.mxu0 %v3321_v0  ;;  %2509 = vmatprep.subr.mxu1 %v3321_v0  ;;  %v245_v36 = vld [vmem:[#allocation10 + $0x18] sm:$0xff]  ;;  %v244_v37 = vld [vmem:[#allocation10 + $0x10] sm:$0xff]  ;;  %v243_v38 = vld [vmem:[#allocation10 + $0x8] sm:$0xff] }
  0x5f   :  { %2479 = vmatpush3.msra.mxu0 %v138_v5  ;;  %2510 = vmatpush3.msra.mxu1 %v255_v22  ;;  %v242_v39 = vld [vmem:[#allocation10] sm:$0xff]  ;;  %v2124_v44 = vld [vmem:[#allocation7] ss:$0 sm:$0xff]  ;;  %v2125_v46 = vld [vmem:[#allocation8] ss:$0 sm:$0xff] }
  0x60   :  { %2480 = vmatprep.subr.mxu0 %v3321_v0  ;;  %2511 = vmatprep.subr.mxu1 %v3321_v0  ;;  %v467_v50 = vld [vmem:[#allocation5 + $0xf8] sm:$0xff]  ;;  %v466_v51 = vld [vmem:[#allocation5 + $0xf0] sm:$0xff]  ;;  %v465_v52 = vld [vmem:[#allocation5 + $0xe8] sm:$0xff] }
  0x61   :  { %2481 = vmatpush3.msra.mxu0 %v137_v6  ;;  %2512 = vmatpush3.msra.mxu1 %v254_v27  ;;  %v464_v53 = vld [vmem:[#allocation5 + $0xe0] sm:$0xff]  ;;  %v463_v54 = vld [vmem:[#allocation5 + $0xd8] sm:$0xff]  ;;  %v462_v55 = vld [vmem:[#allocation5 + $0xd0] sm:$0xff] }
  0x62   :  { %2482 = vmatprep.subr.mxu0 %v3321_v0  ;;  %2513 = vmatprep.subr.mxu1 %v3321_v0  ;;  %v461_v56 = vld [vmem:[#allocation5 + $0xc8] sm:$0xff]  ;;  %v460_v57 = vld [vmem:[#allocation5 + $0xc0] sm:$0xff]  ;;  %v459_v58 = vld [vmem:[#allocation5 + $0xb8] sm:$0xff] }
  0x63   :  { %2483 = vmatpush3.msra.mxu0 %v136_v7  ;;  %2514 = vmatpush3.msra.mxu1 %v253_v28  ;;  %v458_v59 = vld [vmem:[#allocation5 + $0xb0] sm:$0xff]  ;;  %v457_v60 = vld [vmem:[#allocation5 + $0xa8] sm:$0xff]  ;;  %v456_v61 = vld [vmem:[#allocation5 + $0xa0] sm:$0xff] }
  0x64   :  { %2484 = vmatprep.subr.mxu0 %v3321_v0  ;;  %2515 = vmatprep.subr.mxu1 %v3321_v0  ;;  %v455_v62 = vld [vmem:[#allocation5 + $0x98] sm:$0xff]  ;;  %v454_v63 = vld [vmem:[#allocation5 + $0x90] sm:$0xff]  ;;  %v453_v1 = vld [vmem:[#allocation5 + $0x88] sm:$0xff] }
  0x65   :  { %2485 = vmatpush3.msra.mxu0 %v135_v8  ;;  %2516 = vmatpush3.msra.mxu1 %v252_v29  ;;  %v452_v2 = vld [vmem:[#allocation5 + $0x80] sm:$0xff]  ;;  %v372_v7 = vld [vmem:[#allocation13 + $0x78] sm:$0xff] }
  0x66   :  { %2486 = vmatprep.subr.mxu0 %v3321_v0  ;;  %2517 = vmatprep.subr.mxu1 %v3321_v0  ;;  %v371_v8 = vld [vmem:[#allocation13 + $0x70] sm:$0xff]  ;;  %v364_v20 = vld [vmem:[#allocation13 + $0x38] sm:$0xff]  ;;  %v362_v22 = vld [vmem:[#allocation13 + $0x28] sm:$0xff] }
  0x67   :  { %2487 = vmatpush3.msra.mxu0 %v134_v9  ;;  %2518 = vmatpush3.msra.mxu1 %v251_v30  ;;  %v363_v21 = vld [vmem:[#allocation13 + $0x30] sm:$0xff]  ;;  %v360_v27 = vld [vmem:[#allocation13 + $0x18] sm:$0xff]  ;;  %v358_v30 = vld [vmem:[#allocation13 + $0x8] sm:$0xff] }
  0x68   :  { %2488 = vmatprep.subr.mxu0 %v3321_v0  ;;  %2519 = vmatprep.subr.mxu1 %v3321_v0  ;;  %v359_v29 = vld [vmem:[#allocation13 + $0x10] sm:$0xff] }
  0x69   :  { %2489 = vmatpush3.msra.mxu0 %v133_v10  ;;  %2520 = vmatpush3.msra.mxu1 %v250_v31  ;;  %v357_v31 = vld [vmem:[#allocation13] sm:$0xff] }
  0x6a   :  { %2490 = vmatprep.subr.mxu0 %v3321_v0  ;;  %2521 = vmatprep.subr.mxu1 %v3321_v0 }
  0x6b   :  { %2491 = vmatpush3.msra.mxu0 %v132_v11  ;;  %2522 = vmatpush3.msra.mxu1 %v249_v32 }
  0x6c   :  { %2492 = vmatprep.subr.mxu0 %v3321_v0  ;;  %2523 = vmatprep.subr.mxu1 %v3321_v0 }
  0x6d   :  { %2493 = vmatpush3.msra.mxu0 %v131_v12  ;;  %2524 = vmatpush3.msra.mxu1 %v248_v33 }
  0x6e   :  { %2494 = vmatprep.subr.mxu0 %v3321_v0  ;;  %2525 = vmatprep.subr.mxu1 %v3321_v0 }
  0x6f   :  { %2495 = vmatpush3.msra.mxu0 %v130_v13  ;;  %2526 = vmatpush3.msra.mxu1 %v247_v34  ;;  %v370_v13 = vld [vmem:[#allocation13 + $0x68] sm:$0xff] }
  0x70   :  { %2496 = vmatprep.subr.mxu0 %v3321_v0  ;;  %2527 = vmatprep.subr.mxu1 %v3321_v0 }
  0x71   :  { %2497 = vmatpush3.msra.mxu0 %v129_v14  ;;  %2528 = vmatpush3.msra.mxu1 %v246_v35  ;;  %v369_v14 = vld [vmem:[#allocation13 + $0x60] sm:$0xff] }
  0x72   :  { %2498 = vmatprep.subr.mxu0 %v3321_v0  ;;  %2529 = vmatprep.subr.mxu1 %v3321_v0 }
  0x73   :  { %2499 = vmatpush3.msra.mxu0 %v128_v15  ;;  %2530 = vmatpush3.msra.mxu1 %v245_v36  ;;  %v368_v15 = vld [vmem:[#allocation13 + $0x58] sm:$0xff]  ;;  %v2126_v36 = vld [vmem:[%s3821_s5] ss:$0 sm:$0xff] }
  0x74   :  { %2500 = vmatprep.subr.mxu0 %v3321_v0  ;;  %2531 = vmatprep.subr.mxu1 %v3321_v0 }
  0x75   :  { %2501 = vmatpush3.msra.mxu0 %v127_v16  ;;  %2532 = vmatpush3.msra.mxu1 %v244_v37  ;;  %v367_v16 = vld [vmem:[#allocation13 + $0x50] sm:$0xff] }
  0x76   :  { %2503 = vmatmul.mubr.f32.vlgmr.msra.gmra.mxu0 %v3433_v17  ;;  %2540 = vmatprep.subr.mxu0 %v3321_v0 }
  0x77   :  { %2572 = vmatprep.mubr.msk.f32.mxu0 %vm3322_vm0, %v3321_v0  ;;  %2533 = vmatprep.subr.mxu1 %v3321_v0 }
  0x78   :  { %2534 = vmatpush3.msra.mxu1 %v243_v38  ;;  %2541 = vmatpush3.msra.mxu0 %v372_v7  ;;  %v2127_v38 = vld [vmem:[#allocation11] ss:$0 sm:$0xff]  ;;  %v797_v7 = vld [vmem:[#allocation5 + $0x170] sm:$0xff] }
  0x79   :  { %2535 = vmatprep.subr.mxu1 %v3321_v0  ;;  %2542 = vmatprep.subr.mxu0 %v3321_v0 }
  0x7a   :  { %2536 = vmatpush3.msra.mxu1 %v242_v39  ;;  %2543 = vmatpush3.msra.mxu0 %v371_v8  ;;  %v796_v8 = vld [vmem:[#allocation5 + $0x168] sm:$0xff] }
  0x7b   :  { %2575 = vmatprep.subr.mxu1 %v3321_v0  ;;  %2544 = vmatprep.subr.mxu0 %v3321_v0 }
  0x7c   :  { %2545 = vmatpush3.msra.mxu0 %v370_v13  ;;  %v791_v13 = vld [vmem:[#allocation5 + $0x140] sm:$0xff] }
  0x7d   :  { %2546 = vmatprep.subr.mxu0 %v3321_v0 }
  0x7e   :  { %2547 = vmatpush3.msra.mxu0 %v369_v14  ;;  %v790_v14 = vld [vmem:[#allocation5 + $0x138] sm:$0xff] }
  0x7f   :  { %2548 = vmatprep.subr.mxu0 %v3321_v0 }
  0x80   :  { %2549 = vmatpush3.msra.mxu0 %v368_v15  ;;  %v789_v15 = vld [vmem:[#allocation5 + $0x130] sm:$0xff] }
  0x81   :  { %2550 = vmatprep.subr.mxu0 %v3321_v0 }
  0x82   :  { %2551 = vmatpush3.msra.mxu0 %v367_v16  ;;  %v788_v16 = vld [vmem:[#allocation5 + $0x128] sm:$0xff] }
  0x83   :  { %2552 = vmatprep.subr.mxu0 %v3321_v0 }
 0x136   :  { %v209_v18 = vpop.f32.mrf.mxu0 }
 0x137   :  { %215 = vadd.xlane.f32.xlu0 %v209_v18 }
 0x138   :  { %v2504_v19 = vpop.f32.mrf.mxu0 }
 0x139   :  { %v365_v19 = vld [vmem:[#allocation13 + $0x40] sm:$0xff] }
 0x1c0   :  { %v216_v23 = vpop.xlane.xlu0 %215 }
 0x1c1   :  { %v218_v24 = vmul.f32 0.0078125, %v216_v23 }
 0x1c3   :  { %v219_v25 = vsub.f32 %v209_v18, %v218_v24  ;;  %v366_v18 = vld [vmem:[#allocation13 + $0x48] sm:$0xff] }
 0x1c4   :  { %2553 = vmatpush3.msra.mxu0 %v366_v18  ;;  %v787_v18 = vld [vmem:[#allocation5 + $0x120] sm:$0xff] }
 0x1c5   :  { %v220_v26 = vmul.f32 %v219_v25, %v219_v25  ;;  %2554 = vmatprep.subr.mxu0 %v3321_v0 }
 0x1c6   :  { %2555 = vmatpush3.msra.mxu0 %v365_v19  ;;  %v786_v19 = vld [vmem:[#allocation5 + $0x118] sm:$0xff] }
 0x1c7   :  { %221 = vadd.xlane.f32.xlu0 %v220_v26  ;;  %2556 = vmatprep.subr.mxu0 %v3321_v0 }
 0x1c8   :  { %2557 = vmatpush3.msra.mxu0 %v364_v20  ;;  %v785_v20 = vld [vmem:[#allocation5 + $0x110] sm:$0xff] }
 0x1c9   :  { %2558 = vmatprep.subr.mxu0 %v3321_v0 }
 0x1ca   :  { %2559 = vmatpush3.msra.mxu0 %v363_v21  ;;  %v784_v21 = vld [vmem:[#allocation5 + $0x108] sm:$0xff] }
 0x1cb   :  { %2560 = vmatprep.subr.mxu0 %v3321_v0 }
 0x1cc   :  { %2561 = vmatpush3.msra.mxu0 %v362_v22  ;;  %v783_v22 = vld [vmem:[#allocation5 + $0x100] sm:$0xff] }
 0x1cd   :  { %2562 = vmatprep.subr.mxu0 %v3321_v0 }
 0x250   :  { %v222_v40 = vpop.xlane.xlu0 %221 }
 0x251   :  { %v223_v41 = vmul.f32 0.0078125, %v222_v40 }
 0x253   :  { %v224_v42 = vadd.f32 1e-05, %v223_v41 }
 0x255   :  { %3114 = vrsqrt.f32 %v224_v42 }
 0x262   :  { %v3115_v43 = vpop.eup %3114 }
 0x263   :  { %v226_v45 = vmul.f32 %v3115_v43, %v219_v25  ;;  %v361_v25 = vld [vmem:[#allocation13 + $0x20] sm:$0xff]  ;;  %v584_v43 = vld [vmem:[#allocation10 + $0xf8] sm:$0xff] }
 0x264   :  { %2563 = vmatpush3.msra.mxu0 %v361_v25 }
 0x265   :  { %v233_v47 = vmul.f32 %v2124_v44, %v226_v45  ;;  %2564 = vmatprep.subr.mxu0 %v3321_v0  ;;  %v583_v44 = vld [vmem:[#allocation10 + $0xf0] sm:$0xff]  ;;  %v582_v45 = vld [vmem:[#allocation10 + $0xe8] sm:$0xff] }
 0x266   :  { %2565 = vmatpush3.msra.mxu0 %v360_v27 }
 0x267   :  { %v240_v48 = vadd.f32 %v2125_v46, %v233_v47  ;;  %2566 = vmatprep.subr.mxu0 %v3321_v0 }
 0x268   :  { %2567 = vmatpush3.msra.mxu0 %v359_v29 }
 0x269   :  { %v241_v49 = vmax.f32 %v240_v48, 0.0  ;;  %2568 = vmatprep.subr.mxu0 %v3321_v0  ;;  %v581_v48 = vld [vmem:[#allocation10 + $0xe0] sm:$0xff] }
 0x26a   :  { %2569 = vmatpush3.msra.mxu0 %v358_v30 }
 0x26b   :  { %2538 = vmatmul.mubr.f32.vlgmr.msra.gmra.mxu1 %v241_v49  ;;  %2570 = vmatprep.subr.mxu0 %v3321_v0 }
 0x26c   :  { %2576 = vmatpush3.msra.mxu1 %v467_v50  ;;  %2607 = vmatprep.mubr.msk.f32.mxu1 %vm3322_vm0, %v3321_v0  ;;  %v580_v50 = vld [vmem:[#allocation10 + $0xd8] sm:$0xff] }
 0x26d   :  { %2577 = vmatprep.subr.mxu1 %v3321_v0  ;;  %2571 = vmatpush3.msra.mxu0 %v357_v31  ;;  %v702_v31 = vld [vmem:[#allocation13 + $0xf8] sm:$0xff] }
 0x26e   :  { %2578 = vmatpush3.msra.mxu1 %v466_v51  ;;  %2610 = vmatprep.subr.mxu0 %v3321_v0  ;;  %v579_v51 = vld [vmem:[#allocation10 + $0xd0] sm:$0xff] }
 0x26f   :  { %2579 = vmatprep.subr.mxu1 %v3321_v0 }
 0x270   :  { %2580 = vmatpush3.msra.mxu1 %v465_v52  ;;  %v578_v52 = vld [vmem:[#allocation10 + $0xc8] sm:$0xff] }
 0x271   :  { %2581 = vmatprep.subr.mxu1 %v3321_v0 }
 0x272   :  { %2582 = vmatpush3.msra.mxu1 %v464_v53  ;;  %v577_v53 = vld [vmem:[#allocation10 + $0xc0] sm:$0xff] }
 0x273   :  { %2583 = vmatprep.subr.mxu1 %v3321_v0 }
 0x274   :  { %2584 = vmatpush3.msra.mxu1 %v463_v54  ;;  %v576_v54 = vld [vmem:[#allocation10 + $0xb8] sm:$0xff] }
 0x275   :  { %2585 = vmatprep.subr.mxu1 %v3321_v0 }
 0x276   :  { %2586 = vmatpush3.msra.mxu1 %v462_v55  ;;  %v575_v55 = vld [vmem:[#allocation10 + $0xb0] sm:$0xff] }
 0x277   :  { %2587 = vmatprep.subr.mxu1 %v3321_v0 }
 0x278   :  { %2588 = vmatpush3.msra.mxu1 %v461_v56  ;;  %v574_v56 = vld [vmem:[#allocation10 + $0xa8] sm:$0xff] }
 0x279   :  { %2589 = vmatprep.subr.mxu1 %v3321_v0 }
 0x27a   :  { %2590 = vmatpush3.msra.mxu1 %v460_v57  ;;  %v573_v57 = vld [vmem:[#allocation10 + $0xa0] sm:$0xff] }
 0x27b   :  { %2591 = vmatprep.subr.mxu1 %v3321_v0 }
 0x27c   :  { %2592 = vmatpush3.msra.mxu1 %v459_v58 }
 0x27d   :  { %2593 = vmatprep.subr.mxu1 %v3321_v0 }
 0x27e   :  { %2594 = vmatpush3.msra.mxu1 %v458_v59  ;;  %v2129_v59 = vld [vmem:[#allocation7 + $0x1] ss:$0 sm:$0xff] }
 0x27f   :  { %2595 = vmatprep.subr.mxu1 %v3321_v0 }
 0x280   :  { %2596 = vmatpush3.msra.mxu1 %v457_v60  ;;  %v572_v60 = vld [vmem:[#allocation10 + $0x98] sm:$0xff] }
 0x281   :  { %2597 = vmatprep.subr.mxu1 %v3321_v0 }
 0x282   :  { %2598 = vmatpush3.msra.mxu1 %v456_v61 }
 0x283   :  { %2599 = vmatprep.subr.mxu1 %v3321_v0 }
 0x284   :  { %2600 = vmatpush3.msra.mxu1 %v455_v62  ;;  %v2130_v62 = vld [vmem:[#allocation8 + $0x1] ss:$0 sm:$0xff] }
 0x285   :  { %2601 = vmatprep.subr.mxu1 %v3321_v0 }
 0x286   :  { %2602 = vmatpush3.msra.mxu1 %v454_v63  ;;  %v571_v63 = vld [vmem:[#allocation10 + $0x90] sm:$0xff] }
 0x287   :  { %2603 = vmatprep.subr.mxu1 %v3321_v0 }
 0x288   :  { %2604 = vmatpush3.msra.mxu1 %v453_v1 }
 0x289   :  { %2605 = vmatprep.subr.mxu1 %v3321_v0 }
 0x28a   :  { %2606 = vmatpush3.msra.mxu1 %v452_v2  ;;  %v570_v2 = vld [vmem:[#allocation10 + $0x88] sm:$0xff] }
 0x28b   :  { %2608 = vmatmul.mubr.f32.vlgmr.msra.gmra.mxu1 %v3433_v17  ;;  %2645 = vmatprep.subr.mxu1 %v3321_v0 }
 0x28c   :  { %2677 = vmatprep.mubr.msk.f32.mxu1 %vm3322_vm0, %v3321_v0  ;;  %2646 = vmatpush3.msra.mxu1 %v702_v31  ;;  %v1128_v31 = vld [vmem:[#allocation5 + $0x1f0] sm:$0xff] }
 0x28d   :  { %2647 = vmatprep.subr.mxu1 %v3321_v0 }
 0x32b   :  { %v324_v3 = vpop.f32.mrf.mxu1 }
 0x32c   :  { %330 = vadd.xlane.f32.xlu1 %v324_v3 }
 0x32d   :  { %v2539_v4 = vpop.f32.mrf.mxu1 }
 0x32e   :  { %v569_v4 = vld [vmem:[#allocation10 + $0x80] sm:$0xff] }
 0x34b   :  { %v534_v5 = vpop.f32.mrf.mxu1 }
 0x34c   :  { %542 = vadd.xlane.f32.xlu1 %v534_v5 }
 0x34d   :  { %v2609_v6 = vpop.f32.mrf.mxu1 }
 0x34e   :  { %v798_v6 = vld [vmem:[#allocation5 + $0x178] sm:$0xff] }
 0x3b5   :  { %v331_v9 = vpop.xlane.xlu1 %330 }
 0x3b6   :  { %v332_v10 = vmul.f32 0.0078125, %v331_v9  ;;  %v795_v9 = vld [vmem:[#allocation5 + $0x160] sm:$0xff] }
 0x3b8   :  { %v333_v11 = vsub.f32 %v324_v3, %v332_v10  ;;  %v794_v10 = vld [vmem:[#allocation5 + $0x158] sm:$0xff] }
 0x3ba   :  { %v334_v12 = vmul.f32 %v333_v11, %v333_v11 }
 0x3bc   :  { %335 = vadd.xlane.f32.xlu0 %v334_v12  ;;  %v792_v12 = vld [vmem:[#allocation5 + $0x148] sm:$0xff] }
 0x3d5   :  { %v543_v23 = vpop.xlane.xlu1 %542 }
 0x3d6   :  { %v544_v24 = vmul.f32 0.0078125, %v543_v23  ;;  %v2128_v23 = vld [vmem:[%s3824_s8] ss:$0 sm:$0xff] }
 0x3d8   :  { %v3487_v26 = vsub.f32 %v534_v5, %v544_v24 }
 0x3da   :  { %v546_v28 = vmul.f32 %v3487_v26, %v3487_v26 }
 0x3dc   :  { %547 = vadd.xlane.f32.xlu1 %v546_v28 }
 0x445   :  { %v336_v32 = vpop.xlane.xlu0 %335 }
 0x446   :  { %v337_v33 = vmul.f32 0.0078125, %v336_v32  ;;  %v701_v32 = vld [vmem:[#allocation13 + $0xf0] sm:$0xff] }
 0x447   :  { %2648 = vmatpush3.msra.mxu1 %v701_v32  ;;  %v1127_v32 = vld [vmem:[#allocation5 + $0x1e8] sm:$0xff] }
 0x448   :  { %v338_v34 = vadd.f32 1e-05, %v337_v33  ;;  %2649 = vmatprep.subr.mxu1 %v3321_v0 }
 0x44a   :  { %3116 = vrsqrt.f32 %v338_v34 }
 0x457   :  { %v3117_v35 = vpop.eup %3116 }
 0x458   :  { %v340_v37 = vmul.f32 %v3117_v35, %v333_v11  ;;  %v793_v11 = vld [vmem:[#allocation5 + $0x150] sm:$0xff] }
 0x45a   :  { %v347_v39 = vmul.f32 %v2126_v36, %v340_v37  ;;  %v700_v37 = vld [vmem:[#allocation13 + $0xe8] sm:$0xff] }
 0x45b   :  { %2650 = vmatpush3.msra.mxu1 %v700_v37  ;;  %v1122_v37 = vld [vmem:[#allocation5 + $0x1c0] sm:$0xff] }
 0x45c   :  { %v354_v40 = vadd.f32 %v2127_v38, %v347_v39  ;;  %2651 = vmatprep.subr.mxu1 %v3321_v0  ;;  %v699_v38 = vld [vmem:[#allocation13 + $0xe0] sm:$0xff]  ;;  %v698_v39 = vld [vmem:[#allocation13 + $0xd8] sm:$0xff] }
 0x45d   :  { %2652 = vmatpush3.msra.mxu1 %v699_v38  ;;  %v1121_v38 = vld [vmem:[#allocation5 + $0x1b8] sm:$0xff] }
 0x45e   :  { %v355_v41 = vadd.f32 %v354_v40, %v3433_v17  ;;  %2653 = vmatprep.subr.mxu1 %v3321_v0  ;;  %v697_v40 = vld [vmem:[#allocation13 + $0xd0] sm:$0xff] }
 0x45f   :  { %2654 = vmatpush3.msra.mxu1 %v698_v39  ;;  %v1120_v39 = vld [vmem:[#allocation5 + $0x1b0] sm:$0xff] }
 0x460   :  { %v356_v42 = vmax.f32 %v355_v41, 0.0  ;;  %2655 = vmatprep.subr.mxu1 %v3321_v0  ;;  %v696_v41 = vld [vmem:[#allocation13 + $0xc8] sm:$0xff] }
 0x461   :  { %2656 = vmatpush3.msra.mxu1 %v697_v40  ;;  %v1119_v40 = vld [vmem:[#allocation5 + $0x1a8] sm:$0xff] }
 0x462   :  { %2573 = vmatmul.mubr.f32.vlgmr.msra.gmra.mxu0 %v356_v42  ;;  %2657 = vmatprep.subr.mxu1 %v3321_v0  ;;  %v695_v42 = vld [vmem:[#allocation13 + $0xc0] sm:$0xff] }
 0x463   :  { %2611 = vmatpush3.msra.mxu0 %v584_v43  ;;  %2642 = vmatprep.mubr.msk.f32.mxu0 %vm3322_vm0, %v3321_v0  ;;  %v694_v43 = vld [vmem:[#allocation13 + $0xb8] sm:$0xff] }
 0x464   :  { %2612 = vmatprep.subr.mxu0 %v3321_v0  ;;  %2658 = vmatpush3.msra.mxu1 %v696_v41  ;;  %v1118_v41 = vld [vmem:[#allocation5 + $0x1a0] sm:$0xff] }
 0x465   :  { %2613 = vmatpush3.msra.mxu0 %v583_v44  ;;  %v548_v46 = vpop.xlane.xlu1 %547  ;;  %2659 = vmatprep.subr.mxu1 %v3321_v0  ;;  %v693_v44 = vld [vmem:[#allocation13 + $0xb0] sm:$0xff] }
 0x466   :  { %v549_v47 = vmul.f32 0.0078125, %v548_v46  ;;  %2614 = vmatprep.subr.mxu0 %v3321_v0  ;;  %2660 = vmatpush3.msra.mxu1 %v695_v42  ;;  %v1117_v42 = vld [vmem:[#allocation5 + $0x198] sm:$0xff] }
 0x467   :  { %2615 = vmatpush3.msra.mxu0 %v582_v45  ;;  %2661 = vmatprep.subr.mxu1 %v3321_v0  ;;  %v692_v45 = vld [vmem:[#allocation13 + $0xa8] sm:$0xff] }
 0x468   :  { %v550_v49 = vadd.f32 1e-05, %v549_v47  ;;  %2616 = vmatprep.subr.mxu0 %v3321_v0  ;;  %2662 = vmatpush3.msra.mxu1 %v694_v43  ;;  %v691_v47 = vld [vmem:[#allocation13 + $0xa0] sm:$0xff] }
 0x469   :  { %2617 = vmatpush3.msra.mxu0 %v581_v48  ;;  %2663 = vmatprep.subr.mxu1 %v3321_v0  ;;  %v1116_v43 = vld [vmem:[#allocation5 + $0x190] sm:$0xff] }
 0x46a   :  { %3118 = vrsqrt.f32 %v550_v49  ;;  %2618 = vmatprep.subr.mxu0 %v3321_v0  ;;  %2664 = vmatpush3.msra.mxu1 %v693_v44  ;;  %v690_v49 = vld [vmem:[#allocation13 + $0x98] sm:$0xff] }
 0x46b   :  { %2619 = vmatpush3.msra.mxu0 %v580_v50  ;;  %2665 = vmatprep.subr.mxu1 %v3321_v0  ;;  %v1115_v44 = vld [vmem:[#allocation5 + $0x188] sm:$0xff] }
 0x46c   :  { %2620 = vmatprep.subr.mxu0 %v3321_v0  ;;  %2666 = vmatpush3.msra.mxu1 %v692_v45  ;;  %v1114_v45 = vld [vmem:[#allocation5 + $0x180] sm:$0xff] }
 0x46d   :  { %2621 = vmatpush3.msra.mxu0 %v579_v51  ;;  %2667 = vmatprep.subr.mxu1 %v3321_v0  ;;  %v689_v51 = vld [vmem:[#allocation13 + $0x90] sm:$0xff] }
 0x46e   :  { %2622 = vmatprep.subr.mxu0 %v3321_v0  ;;  %2668 = vmatpush3.msra.mxu1 %v691_v47 }
 0x46f   :  { %2623 = vmatpush3.msra.mxu0 %v578_v52  ;;  %2669 = vmatprep.subr.mxu1 %v3321_v0 }
 0x470   :  { %2624 = vmatprep.subr.mxu0 %v3321_v0  ;;  %2670 = vmatpush3.msra.mxu1 %v690_v49 }
 0x471   :  { %2625 = vmatpush3.msra.mxu0 %v577_v53  ;;  %2671 = vmatprep.subr.mxu1 %v3321_v0  ;;  %v688_v53 = vld [vmem:[#allocation13 + $0x88] sm:$0xff] }
 0x472   :  { %2626 = vmatprep.subr.mxu0 %v3321_v0  ;;  %2672 = vmatpush3.msra.mxu1 %v689_v51 }
 0x473   :  { %2627 = vmatpush3.msra.mxu0 %v576_v54  ;;  %2673 = vmatprep.subr.mxu1 %v3321_v0  ;;  %v687_v54 = vld [vmem:[#allocation13 + $0x80] sm:$0xff] }
 0x474   :  { %2628 = vmatprep.subr.mxu0 %v3321_v0  ;;  %2674 = vmatpush3.msra.mxu1 %v688_v53 }
 0x475   :  { %2629 = vmatpush3.msra.mxu0 %v575_v55  ;;  %2675 = vmatprep.subr.mxu1 %v3321_v0 }
 0x476   :  { %2630 = vmatprep.subr.mxu0 %v3321_v0  ;;  %2676 = vmatpush3.msra.mxu1 %v687_v54  ;;  %v1032_v54 = vld [vmem:[#allocation13 + $0x170] sm:$0xff] }
 0x477   :  { %v3119_v58 = vpop.eup %3118  ;;  %2631 = vmatpush3.msra.mxu0 %v574_v56  ;;  %2715 = vmatprep.subr.mxu1 %v3321_v0 }
 0x478   :  { %2632 = vmatprep.subr.mxu0 %v3321_v0  ;;  %v552_v61 = vmul.f32 %v3119_v58, %v3487_v26 }
 0x479   :  { %2633 = vmatpush3.msra.mxu0 %v573_v57 }
 0x47a   :  { %2634 = vmatprep.subr.mxu0 %v3321_v0  ;;  %v559_v1 = vmul.f32 %v2129_v59, %v552_v61  ;;  %v2132_v59 = vld [vmem:[%s3821_s5 + $0x1] ss:$0 sm:$0xff]  ;;  %v2133_v61 = vld [vmem:[#allocation11 + $0x1] ss:$0 sm:$0xff] }
 0x47b   :  { %2635 = vmatpush3.msra.mxu0 %v572_v60 }
 0x47c   :  { %2636 = vmatprep.subr.mxu0 %v3321_v0  ;;  %v566_v3 = vadd.f32 %v2130_v62, %v559_v1 }
 0x47d   :  { %2637 = vmatpush3.msra.mxu0 %v571_v63 }
 0x47e   :  { %2638 = vmatprep.subr.mxu0 %v3321_v0  ;;  %v567_v5 = vmax.f32 %v566_v3, 0.0  ;;  %v915_v3 = vld [vmem:[#allocation10 + $0x178] sm:$0xff] }
 0x47f   :  { %2639 = vmatpush3.msra.mxu0 %v570_v2 }
 0x480   :  { %2640 = vmatprep.subr.mxu0 %v3321_v0 }
 0x481   :  { %2641 = vmatpush3.msra.mxu0 %v569_v4  ;;  %v914_v4 = vld [vmem:[#allocation10 + $0x170] sm:$0xff] }
 0x482   :  { %2643 = vmatmul.mubr.f32.vlgmr.msra.gmra.mxu0 %v567_v5  ;;  %2680 = vmatprep.subr.mxu0 %v3321_v0  ;;  %v913_v5 = vld [vmem:[#allocation10 + $0x168] sm:$0xff] }
 0x483   :  { %2681 = vmatpush3.msra.mxu0 %v798_v6  ;;  %2712 = vmatprep.mubr.msk.f32.mxu0 %vm3322_vm0, %v3321_v0 }
 0x484   :  { %2682 = vmatprep.subr.mxu0 %v3321_v0 }
 0x485   :  { %2683 = vmatpush3.msra.mxu0 %v797_v7 }
 0x486   :  { %2684 = vmatprep.subr.mxu0 %v3321_v0 }
 0x487   :  { %2685 = vmatpush3.msra.mxu0 %v796_v8  ;;  %v912_v8 = vld [vmem:[#allocation10 + $0x160] sm:$0xff] }
 0x488   :  { %2686 = vmatprep.subr.mxu0 %v3321_v0 }
 0x489   :  { %2687 = vmatpush3.msra.mxu0 %v795_v9 }
 0x48a   :  { %2688 = vmatprep.subr.mxu0 %v3321_v0 }
 0x48b   :  { %2689 = vmatpush3.msra.mxu0 %v794_v10  ;;  %v911_v10 = vld [vmem:[#allocation10 + $0x158] sm:$0xff] }
 0x48c   :  { %2690 = vmatprep.subr.mxu0 %v3321_v0 }
 0x48d   :  { %2691 = vmatpush3.msra.mxu0 %v793_v11  ;;  %v910_v11 = vld [vmem:[#allocation10 + $0x150] sm:$0xff] }
 0x48e   :  { %2692 = vmatprep.subr.mxu0 %v3321_v0 }
 0x48f   :  { %2693 = vmatpush3.msra.mxu0 %v792_v12  ;;  %v909_v12 = vld [vmem:[#allocation10 + $0x148] sm:$0xff] }
 0x490   :  { %2694 = vmatprep.subr.mxu0 %v3321_v0 }
 0x491   :  { %2695 = vmatpush3.msra.mxu0 %v791_v13  ;;  %v908_v13 = vld [vmem:[#allocation10 + $0x140] sm:$0xff] }
 0x492   :  { %2696 = vmatprep.subr.mxu0 %v3321_v0 }
 0x493   :  { %2697 = vmatpush3.msra.mxu0 %v790_v14  ;;  %v907_v14 = vld [vmem:[#allocation10 + $0x138] sm:$0xff] }
 0x494   :  { %2698 = vmatprep.subr.mxu0 %v3321_v0 }
 0x495   :  { %2699 = vmatpush3.msra.mxu0 %v789_v15  ;;  %v906_v15 = vld [vmem:[#allocation10 + $0x130] sm:$0xff] }
 0x496   :  { %2700 = vmatprep.subr.mxu0 %v3321_v0 }
 0x497   :  { %2701 = vmatpush3.msra.mxu0 %v788_v16  ;;  %v905_v16 = vld [vmem:[#allocation10 + $0x128] sm:$0xff] }
 0x498   :  { %2702 = vmatprep.subr.mxu0 %v3321_v0 }
 0x499   :  { %2703 = vmatpush3.msra.mxu0 %v787_v18  ;;  %v904_v18 = vld [vmem:[#allocation10 + $0x120] sm:$0xff] }
 0x49a   :  { %2704 = vmatprep.subr.mxu0 %v3321_v0 }
 0x49b   :  { %2705 = vmatpush3.msra.mxu0 %v786_v19 }
 0x49c   :  { %2706 = vmatprep.subr.mxu0 %v3321_v0 }
 0x49d   :  { %2707 = vmatpush3.msra.mxu0 %v785_v20  ;;  %v2136_v20 = vld [vmem:[#allocation7 + $0x2] ss:$0 sm:$0xff] }
 0x49e   :  { %2708 = vmatprep.subr.mxu0 %v3321_v0 }
 0x49f   :  { %2709 = vmatpush3.msra.mxu0 %v784_v21  ;;  %v903_v21 = vld [vmem:[#allocation10 + $0x118] sm:$0xff] }
 0x4a0   :  { %2710 = vmatprep.subr.mxu0 %v3321_v0 }
 0x4a1   :  { %2711 = vmatpush3.msra.mxu0 %v783_v22 }
 0x4a2   :  { %2713 = vmatmul.mubr.f32.vlgmr.msra.gmra.mxu0 %v3433_v17  ;;  %2750 = vmatprep.subr.mxu0 %v3321_v0 }
 0x4a3   :  { %2782 = vmatprep.mubr.msk.f32.mxu0 %vm3322_vm0, %v3321_v0 }
 0x522   :  { %v446_v24 = vpop.f32.mrf.mxu0 }
 0x523   :  { %v447_v25 = vadd.f32 %v2128_v23, %v446_v24  ;;  %v2137_v23 = vld [vmem:[#allocation8 + $0x2] ss:$0 sm:$0xff]  ;;  %v902_v24 = vld [vmem:[#allocation10 + $0x110] sm:$0xff] }
 0x524   :  { %v2574_v26 = vpop.f32.mrf.mxu0 }
 0x525   :  { %450 = vst [vmem:[#allocation14] sm:$0xff] %v447_v25  ;;  %v901_v26 = vld [vmem:[#allocation10 + $0x108] sm:$0xff] }
 0x542   :  { %v651_v27 = vpop.f32.mrf.mxu0 }
 0x543   :  { %659 = vadd.xlane.f32.xlu0 %v651_v27 }
 0x544   :  { %v2644_v28 = vpop.f32.mrf.mxu0 }
 0x545   :  { %v900_v28 = vld [vmem:[#allocation10 + $0x100] sm:$0xff] }
 0x562   :  { %v865_v29 = vpop.f32.mrf.mxu0 }
 0x563   :  { %873 = vadd.xlane.f32.xlu1 %v865_v29 }
 0x564   :  { %v2714_v30 = vpop.f32.mrf.mxu0 }
 0x565   :  { %v1129_v30 = vld [vmem:[#allocation5 + $0x1f8] sm:$0xff] }
 0x5cc   :  { %v660_v33 = vpop.xlane.xlu0 %659 }
 0x5cd   :  { %v661_v34 = vmul.f32 0.0078125, %v660_v33  ;;  %v1126_v33 = vld [vmem:[#allocation5 + $0x1e0] sm:$0xff] }
 0x5cf   :  { %v662_v35 = vsub.f32 %v651_v27, %v661_v34  ;;  %v1125_v34 = vld [vmem:[#allocation5 + $0x1d8] sm:$0xff] }
 0x5d1   :  { %v663_v36 = vmul.f32 %v662_v35, %v662_v35 }
 0x5d3   :  { %664 = vadd.xlane.f32.xlu0 %v663_v36  ;;  %v1123_v36 = vld [vmem:[#allocation5 + $0x1c8] sm:$0xff] }
 0x5ec   :  { %v874_v46 = vpop.xlane.xlu1 %873 }
 0x5ed   :  { %v875_v48 = vmul.f32 0.0078125, %v874_v46  ;;  %v2135_v46 = vld [vmem:[%s3824_s8 + $0x1] ss:$0 sm:$0xff] }
 0x5ef   :  { %v3555_v50 = vsub.f32 %v865_v29, %v875_v48 }
 0x5f1   :  { %v877_v52 = vmul.f32 %v3555_v50, %v3555_v50 }
 0x5f3   :  { %878 = vadd.xlane.f32.xlu1 %v877_v52 }
 0x65c   :  { %v665_v55 = vpop.xlane.xlu0 %664 }
 0x65d   :  { %v666_v56 = vmul.f32 0.0078125, %v665_v55 }
 0x65f   :  { %v667_v57 = vadd.f32 1e-05, %v666_v56 }
 0x661   :  { %3120 = vrsqrt.f32 %v667_v57 }
 0x66e   :  { %v3121_v58 = vpop.eup %3120 }
 0x66f   :  { %v669_v60 = vmul.f32 %v3121_v58, %v662_v35  ;;  %v1124_v35 = vld [vmem:[#allocation5 + $0x1d0] sm:$0xff] }
 0x671   :  { %v676_v62 = vmul.f32 %v2132_v59, %v669_v60  ;;  %v1031_v59 = vld [vmem:[#allocation13 + $0x168] sm:$0xff]  ;;  %v1030_v60 = vld [vmem:[#allocation13 + $0x160] sm:$0xff] }
 0x673   :  { %v683_v63 = vadd.f32 %v2133_v61, %v676_v62  ;;  %v1029_v61 = vld [vmem:[#allocation13 + $0x158] sm:$0xff]  ;;  %v1028_v62 = vld [vmem:[#allocation13 + $0x150] sm:$0xff] }
 0x675   :  { %v684_v1 = vadd.f32 %v683_v63, %v3433_v17  ;;  %v1027_v63 = vld [vmem:[#allocation13 + $0x148] sm:$0xff] }
 0x677   :  { %v685_v2 = vmax.f32 %v684_v1, 0.0  ;;  %v1026_v1 = vld [vmem:[#allocation13 + $0x140] sm:$0xff] }
 0x679   :  { %2678 = vmatmul.mubr.f32.vlgmr.msra.gmra.mxu1 %v685_v2  ;;  %v1025_v2 = vld [vmem:[#allocation13 + $0x138] sm:$0xff] }
 0x67a   :  { %2716 = vmatpush3.msra.mxu1 %v915_v3  ;;  %2747 = vmatprep.mubr.msk.f32.mxu1 %vm3322_vm0, %v3321_v0  ;;  %v1024_v3 = vld [vmem:[#allocation13 + $0x130] sm:$0xff] }
 0x67b   :  { %2717 = vmatprep.subr.mxu1 %v3321_v0 }
 0x67c   :  { %2718 = vmatpush3.msra.mxu1 %v914_v4  ;;  %v879_v6 = vpop.xlane.xlu1 %878  ;;  %v1023_v4 = vld [vmem:[#allocation13 + $0x128] sm:$0xff] }
 0x67d   :  { %2719 = vmatprep.subr.mxu1 %v3321_v0  ;;  %v880_v7 = vmul.f32 0.0078125, %v879_v6  ;;  %v1022_v6 = vld [vmem:[#allocation13 + $0x120] sm:$0xff] }
 0x67e   :  { %2720 = vmatpush3.msra.mxu1 %v913_v5 }
 0x67f   :  { %v881_v9 = vadd.f32 1e-05, %v880_v7  ;;  %2721 = vmatprep.subr.mxu1 %v3321_v0 }
 0x680   :  { %2722 = vmatpush3.msra.mxu1 %v912_v8  ;;  %v1021_v8 = vld [vmem:[#allocation13 + $0x118] sm:$0xff] }
 0x681   :  { %3122 = vrsqrt.f32 %v881_v9  ;;  %2723 = vmatprep.subr.mxu1 %v3321_v0 }
 0x682   :  { %2724 = vmatpush3.msra.mxu1 %v911_v10  ;;  %v1020_v10 = vld [vmem:[#allocation13 + $0x110] sm:$0xff] }
 0x683   :  { %2725 = vmatprep.subr.mxu1 %v3321_v0 }
 0x684   :  { %2726 = vmatpush3.msra.mxu1 %v910_v11 }
 0x685   :  { %2727 = vmatprep.subr.mxu1 %v3321_v0 }
 0x686   :  { %2728 = vmatpush3.msra.mxu1 %v909_v12  ;;  %v1019_v12 = vld [vmem:[#allocation13 + $0x108] sm:$0xff] }
 0x687   :  { %2729 = vmatprep.subr.mxu1 %v3321_v0 }
 0x688   :  { %2730 = vmatpush3.msra.mxu1 %v908_v13  ;;  %v1018_v13 = vld [vmem:[#allocation13 + $0x100] sm:$0xff] }
 0x689   :  { %2731 = vmatprep.subr.mxu1 %v3321_v0 }
 0x68a   :  { %2732 = vmatpush3.msra.mxu1 %v907_v14 }
 0x68b   :  { %2733 = vmatprep.subr.mxu1 %v3321_v0 }
 0x68c   :  { %2734 = vmatpush3.msra.mxu1 %v906_v15 }
 0x68d   :  { %2735 = vmatprep.subr.mxu1 %v3321_v0 }
 0x68e   :  { %v3123_v19 = vpop.eup %3122  ;;  %2736 = vmatpush3.msra.mxu1 %v905_v16 }
 0x68f   :  { %2737 = vmatprep.subr.mxu1 %v3321_v0  ;;  %v883_v22 = vmul.f32 %v3123_v19, %v3555_v50  ;;  %v2139_v19 = vld [vmem:[%s3821_s5 + $0x2] ss:$0 sm:$0xff] }
 0x690   :  { %2738 = vmatpush3.msra.mxu1 %v904_v18 }
 0x691   :  { %2739 = vmatprep.subr.mxu1 %v3321_v0  ;;  %v890_v25 = vmul.f32 %v2136_v20, %v883_v22 }
 0x692   :  { %2740 = vmatpush3.msra.mxu1 %v903_v21  ;;  %v2140_v21 = vld [vmem:[#allocation11 + $0x2] ss:$0 sm:$0xff] }
 0x693   :  { %2741 = vmatprep.subr.mxu1 %v3321_v0  ;;  %v897_v27 = vadd.f32 %v2137_v23, %v890_v25 }
 0x694   :  { %2742 = vmatpush3.msra.mxu1 %v902_v24  ;;  %v3634_v24 = vld [vmem:[#allocation2] sm:$0xff] }
 0x695   :  { %2743 = vmatprep.subr.mxu1 %v3321_v0  ;;  %v898_v29 = vmax.f32 %v897_v27, 0.0  ;;  %v1246_v27 = vld [vmem:[#allocation10 + $0x1f8] sm:$0xff] }
 0x696   :  { %2744 = vmatpush3.msra.mxu1 %v901_v26 }
 0x697   :  { %2745 = vmatprep.subr.mxu1 %v3321_v0 }
 0x698   :  { %2746 = vmatpush3.msra.mxu1 %v900_v28  ;;  %v1245_v28 = vld [vmem:[#allocation10 + $0x1f0] sm:$0xff] }
 0x699   :  { %2748 = vmatmul.mubr.f32.vlgmr.msra.gmra.mxu1 %v898_v29  ;;  %2785 = vmatprep.subr.mxu1 %v3321_v0  ;;  %v1244_v29 = vld [vmem:[#allocation10 + $0x1e8] sm:$0xff] }
 0x69a   :  { %2786 = vmatpush3.msra.mxu1 %v1129_v30  ;;  %2817 = vmatprep.mubr.msk.f32.mxu1 %vm3322_vm0, %v3321_v0 }
 0x69b   :  { %2787 = vmatprep.subr.mxu1 %v3321_v0 }
 0x69c   :  { %2788 = vmatpush3.msra.mxu1 %v1128_v31 }
 0x69d   :  { %2789 = vmatprep.subr.mxu1 %v3321_v0 }
 0x69e   :  { %2790 = vmatpush3.msra.mxu1 %v1127_v32  ;;  %v1243_v32 = vld [vmem:[#allocation10 + $0x1e0] sm:$0xff] }
 0x69f   :  { %2791 = vmatprep.subr.mxu1 %v3321_v0 }
 0x6a0   :  { %2792 = vmatpush3.msra.mxu1 %v1126_v33 }
 0x6a1   :  { %2793 = vmatprep.subr.mxu1 %v3321_v0 }
 0x6a2   :  { %2794 = vmatpush3.msra.mxu1 %v1125_v34  ;;  %v1242_v34 = vld [vmem:[#allocation10 + $0x1d8] sm:$0xff] }
 0x6a3   :  { %2795 = vmatprep.subr.mxu1 %v3321_v0 }
 0x6a4   :  { %2796 = vmatpush3.msra.mxu1 %v1124_v35  ;;  %v1241_v35 = vld [vmem:[#allocation10 + $0x1d0] sm:$0xff] }
 0x6a5   :  { %2797 = vmatprep.subr.mxu1 %v3321_v0 }
 0x6a6   :  { %2798 = vmatpush3.msra.mxu1 %v1123_v36  ;;  %v1240_v36 = vld [vmem:[#allocation10 + $0x1c8] sm:$0xff] }
 0x6a7   :  { %2799 = vmatprep.subr.mxu1 %v3321_v0 }
 0x6a8   :  { %2800 = vmatpush3.msra.mxu1 %v1122_v37  ;;  %v1239_v37 = vld [vmem:[#allocation10 + $0x1c0] sm:$0xff] }
 0x6a9   :  { %2801 = vmatprep.subr.mxu1 %v3321_v0 }
 0x6aa   :  { %2802 = vmatpush3.msra.mxu1 %v1121_v38  ;;  %v1238_v38 = vld [vmem:[#allocation10 + $0x1b8] sm:$0xff] }
 0x6ab   :  { %2803 = vmatprep.subr.mxu1 %v3321_v0 }
 0x6ac   :  { %2804 = vmatpush3.msra.mxu1 %v1120_v39  ;;  %v1237_v39 = vld [vmem:[#allocation10 + $0x1b0] sm:$0xff] }
 0x6ad   :  { %2805 = vmatprep.subr.mxu1 %v3321_v0 }
 0x6ae   :  { %2806 = vmatpush3.msra.mxu1 %v1119_v40  ;;  %v1236_v40 = vld [vmem:[#allocation10 + $0x1a8] sm:$0xff] }
 0x6af   :  { %2807 = vmatprep.subr.mxu1 %v3321_v0 }
 0x6b0   :  { %2808 = vmatpush3.msra.mxu1 %v1118_v41  ;;  %v1235_v41 = vld [vmem:[#allocation10 + $0x1a0] sm:$0xff] }
 0x6b1   :  { %2809 = vmatprep.subr.mxu1 %v3321_v0 }
 0x6b2   :  { %2810 = vmatpush3.msra.mxu1 %v1117_v42 }
 0x6b3   :  { %2811 = vmatprep.subr.mxu1 %v3321_v0 }
 0x6b4   :  { %2812 = vmatpush3.msra.mxu1 %v1116_v43  ;;  %v2143_v43 = vld [vmem:[#allocation7 + $0x3] ss:$0 sm:$0xff] }
 0x6b5   :  { %2813 = vmatprep.subr.mxu1 %v3321_v0 }
 0x6b6   :  { %2814 = vmatpush3.msra.mxu1 %v1115_v44  ;;  %v1234_v44 = vld [vmem:[#allocation10 + $0x198] sm:$0xff] }
 0x6b7   :  { %2815 = vmatprep.subr.mxu1 %v3321_v0 }
 0x6b8   :  { %2816 = vmatpush3.msra.mxu1 %v1114_v45 }
 0x6b9   :  { %2818 = vmatmul.mubr.f32.vlgmr.msra.gmra.mxu1 %v3433_v17  ;;  %2855 = vmatprep.subr.mxu1 %v3321_v0  ;;  %v1033_v17 = vld [vmem:[#allocation13 + $0x178] sm:$0xff] }
 0x6ba   :  { %2887 = vmatprep.mubr.msk.f32.mxu1 %vm3322_vm0, %v3321_v0  ;;  %2751 = vmatpush3.msra.mxu0 %v1033_v17  ;;  %v1459_v17 = vld [vmem:[#allocation5 + $0x270] sm:$0xff] }
 0x6bb   :  { %2752 = vmatprep.subr.mxu0 %v3321_v0 }
 0x6bc   :  { %2753 = vmatpush3.msra.mxu0 %v1032_v54  ;;  %v1458_v54 = vld [vmem:[#allocation5 + $0x268] sm:$0xff] }
 0x6bd   :  { %2754 = vmatprep.subr.mxu0 %v3321_v0 }
 0x6be   :  { %2755 = vmatpush3.msra.mxu0 %v1031_v59  ;;  %v1453_v59 = vld [vmem:[#allocation5 + $0x240] sm:$0xff] }
 0x6bf   :  { %2756 = vmatprep.subr.mxu0 %v3321_v0 }
 0x6c0   :  { %2757 = vmatpush3.msra.mxu0 %v1030_v60  ;;  %v1452_v60 = vld [vmem:[#allocation5 + $0x238] sm:$0xff] }
 0x6c1   :  { %2758 = vmatprep.subr.mxu0 %v3321_v0 }
 0x6c2   :  { %2759 = vmatpush3.msra.mxu0 %v1029_v61  ;;  %v1451_v61 = vld [vmem:[#allocation5 + $0x230] sm:$0xff] }
 0x6c3   :  { %2760 = vmatprep.subr.mxu0 %v3321_v0 }
 0x6c4   :  { %2761 = vmatpush3.msra.mxu0 %v1028_v62  ;;  %v1450_v62 = vld [vmem:[#allocation5 + $0x228] sm:$0xff] }
 0x6c5   :  { %2762 = vmatprep.subr.mxu0 %v3321_v0 }
 0x6c6   :  { %2763 = vmatpush3.msra.mxu0 %v1027_v63  ;;  %v1449_v63 = vld [vmem:[#allocation5 + $0x220] sm:$0xff] }
 0x6c7   :  { %2764 = vmatprep.subr.mxu0 %v3321_v0 }
 0x6c8   :  { %2765 = vmatpush3.msra.mxu0 %v1026_v1  ;;  %v1448_v1 = vld [vmem:[#allocation5 + $0x218] sm:$0xff] }
 0x6c9   :  { %2766 = vmatprep.subr.mxu0 %v3321_v0 }
 0x6ca   :  { %2767 = vmatpush3.msra.mxu0 %v1025_v2  ;;  %v1447_v2 = vld [vmem:[#allocation5 + $0x210] sm:$0xff] }
 0x6cb   :  { %2768 = vmatprep.subr.mxu0 %v3321_v0 }
 0x6cc   :  { %2769 = vmatpush3.msra.mxu0 %v1024_v3  ;;  %v1446_v3 = vld [vmem:[#allocation5 + $0x208] sm:$0xff] }
 0x6cd   :  { %2770 = vmatprep.subr.mxu0 %v3321_v0 }
 0x6ce   :  { %2771 = vmatpush3.msra.mxu0 %v1023_v4  ;;  %v1445_v4 = vld [vmem:[#allocation5 + $0x200] sm:$0xff] }
 0x6cf   :  { %2772 = vmatprep.subr.mxu0 %v3321_v0 }
 0x6d0   :  { %2773 = vmatpush3.msra.mxu0 %v1022_v6 }
 0x6d1   :  { %2774 = vmatprep.subr.mxu0 %v3321_v0 }
 0x6d2   :  { %2775 = vmatpush3.msra.mxu0 %v1021_v8 }
 0x6d3   :  { %2776 = vmatprep.subr.mxu0 %v3321_v0 }
 0x6d4   :  { %2777 = vmatpush3.msra.mxu0 %v1020_v10 }
 0x6d5   :  { %2778 = vmatprep.subr.mxu0 %v3321_v0 }
 0x6d6   :  { %2779 = vmatpush3.msra.mxu0 %v1019_v12 }
 0x6d7   :  { %2780 = vmatprep.subr.mxu0 %v3321_v0 }
 0x6d8   :  { %2781 = vmatpush3.msra.mxu0 %v1018_v13  ;;  %v1364_v13 = vld [vmem:[#allocation13 + $0x1f8] sm:$0xff] }
 0x6d9   :  { %2820 = vmatprep.subr.mxu0 %v3321_v0  ;;  %2856 = vmatpush3.msra.mxu1 %v1364_v13  ;;  %v1790_v13 = vld [vmem:[#allocation5 + $0x2f0] sm:$0xff] }
 0x6da   :  { %2857 = vmatprep.subr.mxu1 %v3321_v0 }
 0x739   :  { %v777_v47 = vpop.f32.mrf.mxu1 }
 0x73a   :  { %v778_v48 = vadd.f32 %v2135_v46, %v777_v47  ;;  %v2144_v46 = vld [vmem:[#allocation8 + $0x3] ss:$0 sm:$0xff]  ;;  %v1233_v47 = vld [vmem:[#allocation10 + $0x190] sm:$0xff] }
 0x73b   :  { %v2679_v49 = vpop.f32.mrf.mxu1 }
 0x73c   :  { %781 = vst [vmem:[#allocation14 + $0x8] sm:$0xff] %v778_v48  ;;  %v1232_v49 = vld [vmem:[#allocation10 + $0x188] sm:$0xff] }
 0x759   :  { %v982_v50 = vpop.f32.mrf.mxu1 }
 0x75a   :  { %990 = vadd.xlane.f32.xlu0 %v982_v50 }
 0x75b   :  { %v2749_v51 = vpop.f32.mrf.mxu1 }
 0x75c   :  { %v1231_v51 = vld [vmem:[#allocation10 + $0x180] sm:$0xff] }
 0x779   :  { %v1196_v52 = vpop.f32.mrf.mxu1 }
 0x77a   :  { %1204 = vadd.xlane.f32.xlu1 %v1196_v52 }
 0x77b   :  { %v2819_v53 = vpop.f32.mrf.mxu1 }
 0x77c   :  { %v1460_v53 = vld [vmem:[#allocation5 + $0x278] sm:$0xff] }
 0x7e3   :  { %v991_v55 = vpop.xlane.xlu0 %990 }
 0x7e4   :  { %v992_v56 = vmul.f32 0.0078125, %v991_v55  ;;  %v1457_v55 = vld [vmem:[#allocation5 + $0x260] sm:$0xff] }
 0x7e6   :  { %v993_v57 = vsub.f32 %v982_v50, %v992_v56  ;;  %v1456_v56 = vld [vmem:[#allocation5 + $0x258] sm:$0xff] }
 0x7e8   :  { %v994_v58 = vmul.f32 %v993_v57, %v993_v57 }
 0x7ea   :  { %995 = vadd.xlane.f32.xlu0 %v994_v58  ;;  %v1454_v58 = vld [vmem:[#allocation5 + $0x248] sm:$0xff] }
 0x803   :  { %v1205_v5 = vpop.xlane.xlu1 %1204 }
 0x804   :  { %v1206_v7 = vmul.f32 0.0078125, %v1205_v5  ;;  %v2142_v5 = vld [vmem:[%s3824_s8 + $0x2] ss:$0 sm:$0xff] }
 0x806   :  { %v3622_v9 = vsub.f32 %v1196_v52, %v1206_v7 }
 0x808   :  { %v1208_v11 = vmul.f32 %v3622_v9, %v3622_v9 }
 0x80a   :  { %1209 = vadd.xlane.f32.xlu1 %v1208_v11 }
 0x873   :  { %v996_v14 = vpop.xlane.xlu0 %995 }
 0x874   :  { %v997_v15 = vmul.f32 0.0078125, %v996_v14  ;;  %v1363_v14 = vld [vmem:[#allocation13 + $0x1f0] sm:$0xff] }
 0x875   :  { %2858 = vmatpush3.msra.mxu1 %v1363_v14  ;;  %v1789_v14 = vld [vmem:[#allocation5 + $0x2e8] sm:$0xff] }
 0x876   :  { %v998_v16 = vadd.f32 1e-05, %v997_v15  ;;  %2859 = vmatprep.subr.mxu1 %v3321_v0 }
 0x878   :  { %3124 = vrsqrt.f32 %v998_v16 }
 0x885   :  { %v3125_v18 = vpop.eup %3124 }
 0x886   :  { %v1000_v20 = vmul.f32 %v3125_v18, %v993_v57  ;;  %v1455_v57 = vld [vmem:[#allocation5 + $0x250] sm:$0xff] }
 0x888   :  { %v1007_v22 = vmul.f32 %v2139_v19, %v1000_v20  ;;  %v1362_v20 = vld [vmem:[#allocation13 + $0x1e8] sm:$0xff] }
 0x889   :  { %2860 = vmatpush3.msra.mxu1 %v1362_v20  ;;  %v1784_v20 = vld [vmem:[#allocation5 + $0x2c0] sm:$0xff] }
 0x88a   :  { %v1014_v23 = vadd.f32 %v2140_v21, %v1007_v22  ;;  %2861 = vmatprep.subr.mxu1 %v3321_v0  ;;  %v1361_v21 = vld [vmem:[#allocation13 + $0x1e0] sm:$0xff]  ;;  %v1360_v22 = vld [vmem:[#allocation13 + $0x1d8] sm:$0xff] }
 0x88b   :  { %2862 = vmatpush3.msra.mxu1 %v1361_v21  ;;  %v1783_v21 = vld [vmem:[#allocation5 + $0x2b8] sm:$0xff] }
 0x88c   :  { %v1015_v25 = vadd.f32 %v3634_v24, %v1014_v23  ;;  %2863 = vmatprep.subr.mxu1 %v3321_v0  ;;  %v1359_v23 = vld [vmem:[#allocation13 + $0x1d0] sm:$0xff] }
 0x88d   :  { %2864 = vmatpush3.msra.mxu1 %v1360_v22  ;;  %v1782_v22 = vld [vmem:[#allocation5 + $0x2b0] sm:$0xff] }
 0x88e   :  { %v1016_v26 = vmax.f32 %v1015_v25, 0.0  ;;  %2865 = vmatprep.subr.mxu1 %v3321_v0  ;;  %v1358_v25 = vld [vmem:[#allocation13 + $0x1c8] sm:$0xff] }
 0x88f   :  { %2866 = vmatpush3.msra.mxu1 %v1359_v23  ;;  %v1781_v23 = vld [vmem:[#allocation5 + $0x2a8] sm:$0xff] }
 0x890   :  { %2783 = vmatmul.mubr.f32.vlgmr.msra.gmra.mxu0 %v1016_v26  ;;  %2867 = vmatprep.subr.mxu1 %v3321_v0  ;;  %v1357_v26 = vld [vmem:[#allocation13 + $0x1c0] sm:$0xff] }
 0x891   :  { %2821 = vmatpush3.msra.mxu0 %v1246_v27  ;;  %2852 = vmatprep.mubr.msk.f32.mxu0 %vm3322_vm0, %v3321_v0  ;;  %v1356_v27 = vld [vmem:[#allocation13 + $0x1b8] sm:$0xff] }
 0x892   :  { %2822 = vmatprep.subr.mxu0 %v3321_v0  ;;  %2868 = vmatpush3.msra.mxu1 %v1358_v25  ;;  %v1780_v25 = vld [vmem:[#allocation5 + $0x2a0] sm:$0xff] }
 0x893   :  { %2823 = vmatpush3.msra.mxu0 %v1245_v28  ;;  %v1210_v30 = vpop.xlane.xlu1 %1209  ;;  %2869 = vmatprep.subr.mxu1 %v3321_v0  ;;  %v1355_v28 = vld [vmem:[#allocation13 + $0x1b0] sm:$0xff] }
 0x894   :  { %2824 = vmatprep.subr.mxu0 %v3321_v0  ;;  %v1211_v31 = vmul.f32 0.0078125, %v1210_v30  ;;  %2870 = vmatpush3.msra.mxu1 %v1357_v26  ;;  %v1779_v26 = vld [vmem:[#allocation5 + $0x298] sm:$0xff] }
 0x895   :  { %2825 = vmatpush3.msra.mxu0 %v1244_v29  ;;  %2871 = vmatprep.subr.mxu1 %v3321_v0  ;;  %v1354_v29 = vld [vmem:[#allocation13 + $0x1a8] sm:$0xff] }
 0x896   :  { %v1212_v33 = vadd.f32 1e-05, %v1211_v31  ;;  %2826 = vmatprep.subr.mxu0 %v3321_v0  ;;  %2872 = vmatpush3.msra.mxu1 %v1356_v27  ;;  %v1353_v31 = vld [vmem:[#allocation13 + $0x1a0] sm:$0xff] }
 0x897   :  { %2827 = vmatpush3.msra.mxu0 %v1243_v32  ;;  %2873 = vmatprep.subr.mxu1 %v3321_v0  ;;  %v1778_v27 = vld [vmem:[#allocation5 + $0x290] sm:$0xff] }
 0x898   :  { %3126 = vrsqrt.f32 %v1212_v33  ;;  %2828 = vmatprep.subr.mxu0 %v3321_v0  ;;  %2874 = vmatpush3.msra.mxu1 %v1355_v28  ;;  %v1352_v33 = vld [vmem:[#allocation13 + $0x198] sm:$0xff] }
 0x899   :  { %2829 = vmatpush3.msra.mxu0 %v1242_v34  ;;  %2875 = vmatprep.subr.mxu1 %v3321_v0  ;;  %v1777_v28 = vld [vmem:[#allocation5 + $0x288] sm:$0xff] }
 0x89a   :  { %2830 = vmatprep.subr.mxu0 %v3321_v0  ;;  %2876 = vmatpush3.msra.mxu1 %v1354_v29  ;;  %v1776_v29 = vld [vmem:[#allocation5 + $0x280] sm:$0xff] }
 0x89b   :  { %2831 = vmatpush3.msra.mxu0 %v1241_v35  ;;  %2877 = vmatprep.subr.mxu1 %v3321_v0  ;;  %v1351_v35 = vld [vmem:[#allocation13 + $0x190] sm:$0xff] }
 0x89c   :  { %2832 = vmatprep.subr.mxu0 %v3321_v0  ;;  %2878 = vmatpush3.msra.mxu1 %v1353_v31 }
 0x89d   :  { %2833 = vmatpush3.msra.mxu0 %v1240_v36  ;;  %2879 = vmatprep.subr.mxu1 %v3321_v0 }
 0x89e   :  { %2834 = vmatprep.subr.mxu0 %v3321_v0  ;;  %2880 = vmatpush3.msra.mxu1 %v1352_v33 }
 0x89f   :  { %2835 = vmatpush3.msra.mxu0 %v1239_v37  ;;  %2881 = vmatprep.subr.mxu1 %v3321_v0  ;;  %v1350_v37 = vld [vmem:[#allocation13 + $0x188] sm:$0xff] }
 0x8a0   :  { %2836 = vmatprep.subr.mxu0 %v3321_v0  ;;  %2882 = vmatpush3.msra.mxu1 %v1351_v35 }
 0x8a1   :  { %2837 = vmatpush3.msra.mxu0 %v1238_v38  ;;  %2883 = vmatprep.subr.mxu1 %v3321_v0  ;;  %v1349_v38 = vld [vmem:[#allocation13 + $0x180] sm:$0xff] }
 0x8a2   :  { %2838 = vmatprep.subr.mxu0 %v3321_v0  ;;  %2884 = vmatpush3.msra.mxu1 %v1350_v37 }
 0x8a3   :  { %2839 = vmatpush3.msra.mxu0 %v1237_v39  ;;  %2885 = vmatprep.subr.mxu1 %v3321_v0 }
 0x8a4   :  { %2840 = vmatprep.subr.mxu0 %v3321_v0  ;;  %2886 = vmatpush3.msra.mxu1 %v1349_v38  ;;  %v1695_v38 = vld [vmem:[#allocation13 + $0x278] sm:$0xff] }
 0x8a5   :  { %v3127_v42 = vpop.eup %3126  ;;  %2841 = vmatpush3.msra.mxu0 %v1236_v40  ;;  %2925 = vmatprep.subr.mxu1 %v3321_v0 }
 0x8a6   :  { %2842 = vmatprep.subr.mxu0 %v3321_v0  ;;  %v1214_v45 = vmul.f32 %v3127_v42, %v3622_v9 }
 0x8a7   :  { %2843 = vmatpush3.msra.mxu0 %v1235_v41 }
 0x8a8   :  { %2844 = vmatprep.subr.mxu0 %v3321_v0  ;;  %v1221_v48 = vmul.f32 %v2143_v43, %v1214_v45  ;;  %v2146_v43 = vld [vmem:[%s3821_s5 + $0x3] ss:$0 sm:$0xff]  ;;  %v2147_v45 = vld [vmem:[#allocation11 + $0x3] ss:$0 sm:$0xff] }
 0x8a9   :  { %2845 = vmatpush3.msra.mxu0 %v1234_v44 }
 0x8aa   :  { %2846 = vmatprep.subr.mxu0 %v3321_v0  ;;  %v1228_v50 = vadd.f32 %v2144_v46, %v1221_v48 }
 0x8ab   :  { %2847 = vmatpush3.msra.mxu0 %v1233_v47 }
 0x8ac   :  { %2848 = vmatprep.subr.mxu0 %v3321_v0  ;;  %v1229_v52 = vmax.f32 %v1228_v50, 0.0  ;;  %v1577_v50 = vld [vmem:[#allocation10 + $0x278] sm:$0xff] }
 0x8ad   :  { %2849 = vmatpush3.msra.mxu0 %v1232_v49 }
 0x8ae   :  { %2850 = vmatprep.subr.mxu0 %v3321_v0 }
 0x8af   :  { %2851 = vmatpush3.msra.mxu0 %v1231_v51  ;;  %v1576_v51 = vld [vmem:[#allocation10 + $0x270] sm:$0xff] }
 0x8b0   :  { %2853 = vmatmul.mubr.f32.vlgmr.msra.gmra.mxu0 %v1229_v52  ;;  %2890 = vmatprep.subr.mxu0 %v3321_v0  ;;  %v1575_v52 = vld [vmem:[#allocation10 + $0x268] sm:$0xff] }
 0x8b1   :  { %2891 = vmatpush3.msra.mxu0 %v1460_v53  ;;  %2922 = vmatprep.mubr.msk.f32.mxu0 %vm3322_vm0, %v3321_v0 }
 0x8b2   :  { %2892 = vmatprep.subr.mxu0 %v3321_v0 }
 0x8b3   :  { %2893 = vmatpush3.msra.mxu0 %v1459_v17 }
 0x8b4   :  { %2894 = vmatprep.subr.mxu0 %v3321_v0 }
 0x8b5   :  { %2895 = vmatpush3.msra.mxu0 %v1458_v54  ;;  %v1574_v54 = vld [vmem:[#allocation10 + $0x260] sm:$0xff] }
 0x8b6   :  { %2896 = vmatprep.subr.mxu0 %v3321_v0 }
 0x8b7   :  { %2897 = vmatpush3.msra.mxu0 %v1457_v55 }
 0x8b8   :  { %2898 = vmatprep.subr.mxu0 %v3321_v0 }
 0x8b9   :  { %2899 = vmatpush3.msra.mxu0 %v1456_v56  ;;  %v1573_v56 = vld [vmem:[#allocation10 + $0x258] sm:$0xff] }
 0x8ba   :  { %2900 = vmatprep.subr.mxu0 %v3321_v0 }
 0x8bb   :  { %2901 = vmatpush3.msra.mxu0 %v1455_v57  ;;  %v1572_v57 = vld [vmem:[#allocation10 + $0x250] sm:$0xff] }
 0x8bc   :  { %2902 = vmatprep.subr.mxu0 %v3321_v0 }
 0x8bd   :  { %2903 = vmatpush3.msra.mxu0 %v1454_v58  ;;  %v1571_v58 = vld [vmem:[#allocation10 + $0x248] sm:$0xff] }
 0x8be   :  { %2904 = vmatprep.subr.mxu0 %v3321_v0 }
 0x8bf   :  { %2905 = vmatpush3.msra.mxu0 %v1453_v59  ;;  %v1570_v59 = vld [vmem:[#allocation10 + $0x240] sm:$0xff] }
 0x8c0   :  { %2906 = vmatprep.subr.mxu0 %v3321_v0 }
 0x8c1   :  { %2907 = vmatpush3.msra.mxu0 %v1452_v60  ;;  %v1569_v60 = vld [vmem:[#allocation10 + $0x238] sm:$0xff] }
 0x8c2   :  { %2908 = vmatprep.subr.mxu0 %v3321_v0 }
 0x8c3   :  { %2909 = vmatpush3.msra.mxu0 %v1451_v61  ;;  %v1568_v61 = vld [vmem:[#allocation10 + $0x230] sm:$0xff] }
 0x8c4   :  { %2910 = vmatprep.subr.mxu0 %v3321_v0 }
 0x8c5   :  { %2911 = vmatpush3.msra.mxu0 %v1450_v62  ;;  %v1567_v62 = vld [vmem:[#allocation10 + $0x228] sm:$0xff] }
 0x8c6   :  { %2912 = vmatprep.subr.mxu0 %v3321_v0 }
 0x8c7   :  { %2913 = vmatpush3.msra.mxu0 %v1449_v63  ;;  %v1566_v63 = vld [vmem:[#allocation10 + $0x220] sm:$0xff] }
 0x8c8   :  { %2914 = vmatprep.subr.mxu0 %v3321_v0 }
 0x8c9   :  { %2915 = vmatpush3.msra.mxu0 %v1448_v1 }
 0x8ca   :  { %2916 = vmatprep.subr.mxu0 %v3321_v0 }
 0x8cb   :  { %2917 = vmatpush3.msra.mxu0 %v1447_v2  ;;  %v2150_v2 = vld [vmem:[#allocation7 + $0x4] ss:$0 sm:$0xff] }
 0x8cc   :  { %2918 = vmatprep.subr.mxu0 %v3321_v0 }
 0x8cd   :  { %2919 = vmatpush3.msra.mxu0 %v1446_v3  ;;  %v1565_v3 = vld [vmem:[#allocation10 + $0x218] sm:$0xff] }
 0x8ce   :  { %2920 = vmatprep.subr.mxu0 %v3321_v0 }
 0x8cf   :  { %2921 = vmatpush3.msra.mxu0 %v1445_v4 }
 0x8d0   :  { %2923 = vmatmul.mubr.f32.vlgmr.msra.gmra.mxu0 %v3634_v24  ;;  %2960 = vmatprep.subr.mxu0 %v3321_v0 }
 0x8d1   :  { %2992 = vmatprep.mubr.msk.f32.mxu0 %vm3322_vm0, %v3321_v0  ;;  %2961 = vmatpush3.msra.mxu0 %v1695_v38 }
 0x8d2   :  { %2962 = vmatprep.subr.mxu0 %v3321_v0 }
 0x950   :  { %v1108_v6 = vpop.f32.mrf.mxu0 }
 0x951   :  { %v1109_v7 = vadd.f32 %v2142_v5, %v1108_v6  ;;  %v2151_v5 = vld [vmem:[#allocation8 + $0x4] ss:$0 sm:$0xff]  ;;  %v1564_v6 = vld [vmem:[#allocation10 + $0x210] sm:$0xff] }
 0x952   :  { %v2784_v8 = vpop.f32.mrf.mxu0 }
 0x953   :  { %1112 = vst [vmem:[#allocation14 + $0x10] sm:$0xff] %v1109_v7  ;;  %v1563_v8 = vld [vmem:[#allocation10 + $0x208] sm:$0xff] }
 0x970   :  { %v1313_v9 = vpop.f32.mrf.mxu0 }
 0x971   :  { %1321 = vadd.xlane.f32.xlu0 %v1313_v9 }
 0x972   :  { %v2854_v10 = vpop.f32.mrf.mxu0 }
 0x973   :  { %v1562_v10 = vld [vmem:[#allocation10 + $0x200] sm:$0xff] }
 0x990   :  { %v1527_v11 = vpop.f32.mrf.mxu0 }
 0x991   :  { %1535 = vadd.xlane.f32.xlu1 %v1527_v11 }
 0x992   :  { %v2924_v12 = vpop.f32.mrf.mxu0 }
 0x993   :  { %v1791_v12 = vld [vmem:[#allocation5 + $0x2f8] sm:$0xff] }
 0x9fa   :  { %v1322_v15 = vpop.xlane.xlu0 %1321 }
 0x9fb   :  { %v1323_v16 = vmul.f32 0.0078125, %v1322_v15  ;;  %v1788_v15 = vld [vmem:[#allocation5 + $0x2e0] sm:$0xff] }
 0x9fd   :  { %v1324_v18 = vsub.f32 %v1313_v9, %v1323_v16  ;;  %v1787_v16 = vld [vmem:[#allocation5 + $0x2d8] sm:$0xff] }
 0x9ff   :  { %v1325_v19 = vmul.f32 %v1324_v18, %v1324_v18 }
 0xa01   :  { %1326 = vadd.xlane.f32.xlu0 %v1325_v19  ;;  %v1785_v19 = vld [vmem:[#allocation5 + $0x2c8] sm:$0xff] }
 0xa1a   :  { %v1536_v30 = vpop.xlane.xlu1 %1535 }
 0xa1b   :  { %v1537_v32 = vmul.f32 0.0078125, %v1536_v30  ;;  %v2149_v30 = vld [vmem:[%s3824_s8 + $0x3] ss:$0 sm:$0xff] }
 0xa1d   :  { %v3691_v34 = vsub.f32 %v1527_v11, %v1537_v32 }
 0xa1f   :  { %v1539_v36 = vmul.f32 %v3691_v34, %v3691_v34 }
 0xa21   :  { %1540 = vadd.xlane.f32.xlu1 %v1539_v36 }
 0xa8a   :  { %v1327_v39 = vpop.xlane.xlu0 %1326 }
 0xa8b   :  { %v1328_v40 = vmul.f32 0.0078125, %v1327_v39  ;;  %v1694_v39 = vld [vmem:[#allocation13 + $0x270] sm:$0xff] }
 0xa8c   :  { %2963 = vmatpush3.msra.mxu0 %v1694_v39 }
 0xa8d   :  { %v1329_v41 = vadd.f32 1e-05, %v1328_v40  ;;  %2964 = vmatprep.subr.mxu0 %v3321_v0 }
 0xa8f   :  { %3128 = vrsqrt.f32 %v1329_v41 }
 0xa9c   :  { %v3129_v42 = vpop.eup %3128 }
 0xa9d   :  { %v1331_v44 = vmul.f32 %v3129_v42, %v1324_v18  ;;  %v1786_v18 = vld [vmem:[#allocation5 + $0x2d0] sm:$0xff] }
 0xa9f   :  { %v1338_v46 = vmul.f32 %v2146_v43, %v1331_v44  ;;  %v1693_v44 = vld [vmem:[#allocation13 + $0x268] sm:$0xff] }
 0xaa0   :  { %2965 = vmatpush3.msra.mxu0 %v1693_v44 }
 0xaa1   :  { %v1345_v47 = vadd.f32 %v2147_v45, %v1338_v46  ;;  %2966 = vmatprep.subr.mxu0 %v3321_v0  ;;  %v1692_v45 = vld [vmem:[#allocation13 + $0x260] sm:$0xff]  ;;  %v1691_v46 = vld [vmem:[#allocation13 + $0x258] sm:$0xff] }
 0xaa2   :  { %2967 = vmatpush3.msra.mxu0 %v1692_v45 }
 0xaa3   :  { %v1346_v48 = vadd.f32 %v3634_v24, %v1345_v47  ;;  %2968 = vmatprep.subr.mxu0 %v3321_v0  ;;  %v1690_v47 = vld [vmem:[#allocation13 + $0x250] sm:$0xff] }
 0xaa4   :  { %2969 = vmatpush3.msra.mxu0 %v1691_v46 }
 0xaa5   :  { %v1347_v49 = vmax.f32 %v1346_v48, 0.0  ;;  %2970 = vmatprep.subr.mxu0 %v3321_v0  ;;  %v1689_v48 = vld [vmem:[#allocation13 + $0x248] sm:$0xff] }
 0xaa6   :  { %2971 = vmatpush3.msra.mxu0 %v1690_v47 }
 0xaa7   :  { %2888 = vmatmul.mubr.f32.vlgmr.msra.gmra.mxu1 %v1347_v49  ;;  %2972 = vmatprep.subr.mxu0 %v3321_v0  ;;  %v1688_v49 = vld [vmem:[#allocation13 + $0x240] sm:$0xff] }
 0xaa8   :  { %2926 = vmatpush3.msra.mxu1 %v1577_v50  ;;  %2957 = vmatprep.mubr.msk.f32.mxu1 %vm3322_vm0, %v3321_v0  ;;  %v1687_v50 = vld [vmem:[#allocation13 + $0x238] sm:$0xff] }
 0xaa9   :  { %2927 = vmatprep.subr.mxu1 %v3321_v0  ;;  %2973 = vmatpush3.msra.mxu0 %v1689_v48  ;;  %v2024_v48 = vld [vmem:[#allocation13 + $0x2e8] sm:$0xff] }
 0xaaa   :  { %2928 = vmatpush3.msra.mxu1 %v1576_v51  ;;  %v1541_v53 = vpop.xlane.xlu1 %1540  ;;  %2974 = vmatprep.subr.mxu0 %v3321_v0  ;;  %v1686_v51 = vld [vmem:[#allocation13 + $0x230] sm:$0xff] }
 0xaab   :  { %2929 = vmatprep.subr.mxu1 %v3321_v0  ;;  %v1542_v17 = vmul.f32 0.0078125, %v1541_v53  ;;  %2975 = vmatpush3.msra.mxu0 %v1688_v49  ;;  %v2023_v49 = vld [vmem:[#allocation13 + $0x2e0] sm:$0xff] }
 0xaac   :  { %2930 = vmatpush3.msra.mxu1 %v1575_v52  ;;  %2976 = vmatprep.subr.mxu0 %v3321_v0  ;;  %v1685_v52 = vld [vmem:[#allocation13 + $0x228] sm:$0xff] }
 0xaad   :  { %v1543_v55 = vadd.f32 1e-05, %v1542_v17  ;;  %2931 = vmatprep.subr.mxu1 %v3321_v0  ;;  %2977 = vmatpush3.msra.mxu0 %v1687_v50  ;;  %v1684_v17 = vld [vmem:[#allocation13 + $0x220] sm:$0xff]  ;;  %v2022_v50 = vld [vmem:[#allocation13 + $0x2d8] sm:$0xff] }
 0xaae   :  { %2932 = vmatpush3.msra.mxu1 %v1574_v54  ;;  %2978 = vmatprep.subr.mxu0 %v3321_v0 }
 0xaaf   :  { %3130 = vrsqrt.f32 %v1543_v55  ;;  %2933 = vmatprep.subr.mxu1 %v3321_v0  ;;  %2979 = vmatpush3.msra.mxu0 %v1686_v51  ;;  %v1683_v55 = vld [vmem:[#allocation13 + $0x218] sm:$0xff]  ;;  %v2021_v51 = vld [vmem:[#allocation13 + $0x2d0] sm:$0xff] }
 0xab0   :  { %2934 = vmatpush3.msra.mxu1 %v1573_v56  ;;  %2980 = vmatprep.subr.mxu0 %v3321_v0 }
 0xab1   :  { %2935 = vmatprep.subr.mxu1 %v3321_v0  ;;  %2981 = vmatpush3.msra.mxu0 %v1685_v52  ;;  %v2020_v52 = vld [vmem:[#allocation13 + $0x2c8] sm:$0xff] }
 0xab2   :  { %2936 = vmatpush3.msra.mxu1 %v1572_v57  ;;  %2982 = vmatprep.subr.mxu0 %v3321_v0  ;;  %v1682_v57 = vld [vmem:[#allocation13 + $0x210] sm:$0xff] }
 0xab3   :  { %2937 = vmatprep.subr.mxu1 %v3321_v0  ;;  %2983 = vmatpush3.msra.mxu0 %v1684_v17  ;;  %v2018_v17 = vld [vmem:[#allocation13 + $0x2b8] sm:$0xff] }
 0xab4   :  { %2938 = vmatpush3.msra.mxu1 %v1571_v58  ;;  %2984 = vmatprep.subr.mxu0 %v3321_v0 }
 0xab5   :  { %2939 = vmatprep.subr.mxu1 %v3321_v0  ;;  %2985 = vmatpush3.msra.mxu0 %v1683_v55  ;;  %v2016_v55 = vld [vmem:[#allocation13 + $0x2a8] sm:$0xff] }
 0xab6   :  { %2940 = vmatpush3.msra.mxu1 %v1570_v59  ;;  %2986 = vmatprep.subr.mxu0 %v3321_v0  ;;  %v1681_v59 = vld [vmem:[#allocation13 + $0x208] sm:$0xff] }
 0xab7   :  { %2941 = vmatprep.subr.mxu1 %v3321_v0  ;;  %2987 = vmatpush3.msra.mxu0 %v1682_v57  ;;  %v2014_v57 = vld [vmem:[#allocation13 + $0x298] sm:$0xff] }
 0xab8   :  { %2942 = vmatpush3.msra.mxu1 %v1569_v60  ;;  %2988 = vmatprep.subr.mxu0 %v3321_v0  ;;  %v1680_v60 = vld [vmem:[#allocation13 + $0x200] sm:$0xff] }
 0xab9   :  { %2943 = vmatprep.subr.mxu1 %v3321_v0  ;;  %2989 = vmatpush3.msra.mxu0 %v1681_v59  ;;  %v2012_v59 = vld [vmem:[#allocation13 + $0x288] sm:$0xff] }
 0xaba   :  { %2944 = vmatpush3.msra.mxu1 %v1568_v61  ;;  %2990 = vmatprep.subr.mxu0 %v3321_v0 }
 0xabb   :  { %2945 = vmatprep.subr.mxu1 %v3321_v0  ;;  %2991 = vmatpush3.msra.mxu0 %v1680_v60  ;;  %v2011_v60 = vld [vmem:[#allocation13 + $0x280] sm:$0xff] }
 0xabc   :  { %v3131_v1 = vpop.eup %3130  ;;  %2946 = vmatpush3.msra.mxu1 %v1567_v62  ;;  %3030 = vmatprep.subr.mxu0 %v3321_v0 }
 0xabd   :  { %2947 = vmatprep.subr.mxu1 %v3321_v0  ;;  %v1545_v4 = vmul.f32 %v3131_v1, %v3691_v34 }
 0xabe   :  { %2948 = vmatpush3.msra.mxu1 %v1566_v63 }
 0xabf   :  { %2949 = vmatprep.subr.mxu1 %v3321_v0  ;;  %v1552_v7 = vmul.f32 %v2150_v2, %v1545_v4  ;;  %v2153_v2 = vld [vmem:[%s3821_s5 + $0x4] ss:$0 sm:$0xff]  ;;  %v2154_v4 = vld [vmem:[#allocation11 + $0x4] ss:$0 sm:$0xff] }
 0xac0   :  { %2950 = vmatpush3.msra.mxu1 %v1565_v3 }
 0xac1   :  { %2951 = vmatprep.subr.mxu1 %v3321_v0  ;;  %v1559_v9 = vadd.f32 %v2151_v5, %v1552_v7 }
 0xac2   :  { %2952 = vmatpush3.msra.mxu1 %v1564_v6 }
 0xac3   :  { %2953 = vmatprep.subr.mxu1 %v3321_v0  ;;  %v1560_v11 = vmax.f32 %v1559_v9, 0.0  ;;  %v1908_v9 = vld [vmem:[#allocation10 + $0x2f8] sm:$0xff] }
 0xac4   :  { %2954 = vmatpush3.msra.mxu1 %v1563_v8 }
 0xac5   :  { %2955 = vmatprep.subr.mxu1 %v3321_v0 }
 0xac6   :  { %2956 = vmatpush3.msra.mxu1 %v1562_v10  ;;  %v1907_v10 = vld [vmem:[#allocation10 + $0x2f0] sm:$0xff] }
 0xac7   :  { %2958 = vmatmul.mubr.f32.vlgmr.msra.gmra.mxu1 %v1560_v11  ;;  %2995 = vmatprep.subr.mxu1 %v3321_v0  ;;  %v1906_v11 = vld [vmem:[#allocation10 + $0x2e8] sm:$0xff] }
 0xac8   :  { %2996 = vmatpush3.msra.mxu1 %v1791_v12  ;;  %3027 = vmatprep.mubr.msk.f32.mxu1 %vm3322_vm0, %v3321_v0 }
 0xac9   :  { %2997 = vmatprep.subr.mxu1 %v3321_v0 }
 0xaca   :  { %2998 = vmatpush3.msra.mxu1 %v1790_v13 }
 0xacb   :  { %2999 = vmatprep.subr.mxu1 %v3321_v0 }
 0xacc   :  { %3000 = vmatpush3.msra.mxu1 %v1789_v14  ;;  %v1905_v14 = vld [vmem:[#allocation10 + $0x2e0] sm:$0xff] }
 0xacd   :  { %3001 = vmatprep.subr.mxu1 %v3321_v0 }
 0xace   :  { %3002 = vmatpush3.msra.mxu1 %v1788_v15 }
 0xacf   :  { %3003 = vmatprep.subr.mxu1 %v3321_v0 }
 0xad0   :  { %3004 = vmatpush3.msra.mxu1 %v1787_v16  ;;  %v1903_v16 = vld [vmem:[#allocation10 + $0x2d0] sm:$0xff] }
 0xad1   :  { %3005 = vmatprep.subr.mxu1 %v3321_v0 }
 0xad2   :  { %3006 = vmatpush3.msra.mxu1 %v1786_v18  ;;  %v1902_v18 = vld [vmem:[#allocation10 + $0x2c8] sm:$0xff] }
 0xad3   :  { %3007 = vmatprep.subr.mxu1 %v3321_v0 }
 0xad4   :  { %3008 = vmatpush3.msra.mxu1 %v1785_v19  ;;  %v1901_v19 = vld [vmem:[#allocation10 + $0x2c0] sm:$0xff] }
 0xad5   :  { %3009 = vmatprep.subr.mxu1 %v3321_v0 }
 0xad6   :  { %3010 = vmatpush3.msra.mxu1 %v1784_v20  ;;  %v1900_v20 = vld [vmem:[#allocation10 + $0x2b8] sm:$0xff] }
 0xad7   :  { %3011 = vmatprep.subr.mxu1 %v3321_v0 }
 0xad8   :  { %3012 = vmatpush3.msra.mxu1 %v1783_v21  ;;  %v1899_v21 = vld [vmem:[#allocation10 + $0x2b0] sm:$0xff] }
 0xad9   :  { %3013 = vmatprep.subr.mxu1 %v3321_v0 }
 0xada   :  { %3014 = vmatpush3.msra.mxu1 %v1782_v22  ;;  %v1898_v22 = vld [vmem:[#allocation10 + $0x2a8] sm:$0xff] }
 0xadb   :  { %3015 = vmatprep.subr.mxu1 %v3321_v0 }
 0xadc   :  { %3016 = vmatpush3.msra.mxu1 %v1781_v23  ;;  %v1897_v23 = vld [vmem:[#allocation10 + $0x2a0] sm:$0xff] }
 0xadd   :  { %3017 = vmatprep.subr.mxu1 %v3321_v0 }
 0xade   :  { %3018 = vmatpush3.msra.mxu1 %v1780_v25 }
 0xadf   :  { %3019 = vmatprep.subr.mxu1 %v3321_v0 }
 0xae0   :  { %3020 = vmatpush3.msra.mxu1 %v1779_v26  ;;  %v2157_v26 = vld [vmem:[#allocation7 + $0x5] ss:$0 sm:$0xff] }
 0xae1   :  { %3021 = vmatprep.subr.mxu1 %v3321_v0 }
 0xae2   :  { %3022 = vmatpush3.msra.mxu1 %v1778_v27  ;;  %v1896_v27 = vld [vmem:[#allocation10 + $0x298] sm:$0xff] }
 0xae3   :  { %3023 = vmatprep.subr.mxu1 %v3321_v0 }
 0xae4   :  { %3024 = vmatpush3.msra.mxu1 %v1777_v28 }
 0xae5   :  { %3025 = vmatprep.subr.mxu1 %v3321_v0 }
 0xae6   :  { %3026 = vmatpush3.msra.mxu1 %v1776_v29  ;;  %v2158_v29 = vld [vmem:[#allocation8 + $0x5] ss:$0 sm:$0xff] }
 0xae7   :  { %3028 = vmatmul.mubr.f32.vlgmr.msra.gmra.mxu1 %v3634_v24  ;;  %3065 = vmatprep.subr.mxu1 %v3321_v0 }
 0xae8   :  { %3097 = vmatprep.mubr.msk.f32.mxu1 %vm3322_vm0, %v3321_v0 }
 0xb67   :  { %v1439_v31 = vpop.f32.mrf.mxu1 }
 0xb68   :  { %v1440_v32 = vadd.f32 %v2149_v30, %v1439_v31  ;;  %v1895_v30 = vld [vmem:[#allocation10 + $0x290] sm:$0xff] }
 0xb69   :  { %v2889_v33 = vpop.f32.mrf.mxu1 }
 0xb6a   :  { %1443 = vst [vmem:[#allocation14 + $0x18] sm:$0xff] %v1440_v32  ;;  %v1894_v32 = vld [vmem:[#allocation10 + $0x288] sm:$0xff] }
 0xb87   :  { %v1644_v34 = vpop.f32.mrf.mxu1 }
 0xb88   :  { %1652 = vadd.xlane.f32.xlu0 %v1644_v34 }
 0xb89   :  { %v2959_v35 = vpop.f32.mrf.mxu1 }
 0xba7   :  { %v1858_v36 = vpop.f32.mrf.mxu1 }
 0xba8   :  { %1866 = vadd.xlane.f32.xlu1 %v1858_v36 }
 0xba9   :  { %v3029_v37 = vpop.f32.mrf.mxu1 }
 0xc11   :  { %v1653_v40 = vpop.xlane.xlu0 %1652 }
 0xc12   :  { %v1654_v41 = vmul.f32 0.0078125, %v1653_v40 }
 0xc14   :  { %v1655_v42 = vsub.f32 %v1644_v34, %v1654_v41  ;;  %v1893_v34 = vld [vmem:[#allocation10 + $0x280] sm:$0xff] }
 0xc16   :  { %v1656_v43 = vmul.f32 %v1655_v42, %v1655_v42 }
 0xc18   :  { %1657 = vadd.xlane.f32.xlu0 %v1656_v43  ;;  %v2025_v43 = vld [vmem:[#allocation13 + $0x2f0] sm:$0xff] }
 0xc31   :  { %v1867_v53 = vpop.xlane.xlu1 %1866 }
 0xc32   :  { %v1868_v54 = vmul.f32 0.0078125, %v1867_v53  ;;  %v2019_v53 = vld [vmem:[#allocation13 + $0x2c0] sm:$0xff] }
 0xc34   :  { %v3758_v56 = vsub.f32 %v1858_v36, %v1868_v54  ;;  %v2156_v36 = vld [vmem:[%s3824_s8 + $0x4] ss:$0 sm:$0xff]  ;;  %v2017_v54 = vld [vmem:[#allocation13 + $0x2b0] sm:$0xff] }
 0xc36   :  { %v1870_v58 = vmul.f32 %v3758_v56, %v3758_v56 }
 0xc38   :  { %1871 = vadd.xlane.f32.xlu1 %v1870_v58  ;;  %v2013_v58 = vld [vmem:[#allocation13 + $0x290] sm:$0xff] }
 0xca1   :  { %v1658_v61 = vpop.xlane.xlu0 %1657 }
 0xca2   :  { %v1659_v62 = vmul.f32 0.0078125, %v1658_v61 }
 0xca4   :  { %v1660_v63 = vadd.f32 1e-05, %v1659_v62 }
 0xca6   :  { %3132 = vrsqrt.f32 %v1660_v63 }
 0xcb3   :  { %v3133_v1 = vpop.eup %3132 }
 0xcb4   :  { %v1662_v3 = vmul.f32 %v3133_v1, %v1655_v42  ;;  %v2026_v42 = vld [vmem:[#allocation13 + $0x2f8] sm:$0xff] }
 0xcb5   :  { %3066 = vmatpush3.msra.mxu1 %v2026_v42 }
 0xcb6   :  { %v1669_v5 = vmul.f32 %v2153_v2, %v1662_v3  ;;  %3067 = vmatprep.subr.mxu1 %v3321_v0  ;;  %v2160_v2 = vld [vmem:[%s3821_s5 + $0x5] ss:$0 sm:$0xff]  ;;  %s3280_s5 = scalar_lea.vmem %s2113_s2, 768 }
 0xcb7   :  { %3068 = vmatpush3.msra.mxu1 %v2025_v43  ;;  %p3281_p7 = scmp.ne.s32.totalorder %s2113_s2, %s3280_s5  ;;  %p3286_p9 = scmp.lt.s32.totalorder %s3280_s5, %s3280_s5 }
 0xcb8   :  { %v1676_v6 = vadd.f32 %v2154_v4, %v1669_v5  ;;  %3069 = vmatprep.subr.mxu1 %v3321_v0  ;;  %v2161_v4 = vld [vmem:[#allocation11 + $0x5] ss:$0 sm:$0xff] }
 0xcb9   :  { %3070 = vmatpush3.msra.mxu1 %v2024_v48  ;;  %p3287_p10 = por %p3286_p9, %p3285_p8 }
 0xcba   :  { %v1677_v7 = vadd.f32 %v3634_v24, %v1676_v6  ;;  %v1904_v24 = vld [vmem:[#allocation10 + $0x2d8] sm:$0xff]  ;;  %3071 = vmatprep.subr.mxu1 %v3321_v0 }
 0xcbb   :  { %3072 = vmatpush3.msra.mxu1 %v2023_v49  ;;  %p3288_p11 = pnand %p3287_p10, %p3281_p7 }
 0xcbc   :  { %v1678_v8 = vmax.f32 %v1677_v7, 0.0  ;;  %3073 = vmatprep.subr.mxu1 %v3321_v0  ;;  %v3139_v7 = vld [vmem:[#allocation2] sm:$0xff] }
 0xcbd   :  { %3074 = vmatpush3.msra.mxu1 %v2022_v50 }
 0xcbe   :  { %2993 = vmatmul.mubr.f32.vlgmr.msra.gmra.mxu0 %v1678_v8  ;;  %3075 = vmatprep.subr.mxu1 %v3321_v0 }
 0xcbf   :  { %3031 = vmatpush3.msra.mxu0 %v1908_v9  ;;  %3062 = vmatprep.mubr.msk.f32.mxu0 %vm3322_vm0, %v3321_v0 }
 0xcc0   :  { %3032 = vmatprep.subr.mxu0 %v3321_v0  ;;  %3076 = vmatpush3.msra.mxu1 %v2021_v51 }
 0xcc1   :  { %3033 = vmatpush3.msra.mxu0 %v1907_v10  ;;  %v1872_v12 = vpop.xlane.xlu1 %1871  ;;  %3077 = vmatprep.subr.mxu1 %v3321_v0 }
 0xcc2   :  { %3034 = vmatprep.subr.mxu0 %v3321_v0  ;;  %v1873_v13 = vmul.f32 0.0078125, %v1872_v12  ;;  %3078 = vmatpush3.msra.mxu1 %v2020_v52 }
 0xcc3   :  { %3035 = vmatpush3.msra.mxu0 %v1906_v11  ;;  %3079 = vmatprep.subr.mxu1 %v3321_v0 }
 0xcc4   :  { %v1874_v15 = vadd.f32 1e-05, %v1873_v13  ;;  %3036 = vmatprep.subr.mxu0 %v3321_v0  ;;  %3080 = vmatpush3.msra.mxu1 %v2019_v53 }
 0xcc5   :  { %3037 = vmatpush3.msra.mxu0 %v1905_v14  ;;  %3081 = vmatprep.subr.mxu1 %v3321_v0 }
 0xcc6   :  { %3134 = vrsqrt.f32 %v1874_v15  ;;  %3038 = vmatprep.subr.mxu0 %v3321_v0  ;;  %3082 = vmatpush3.msra.mxu1 %v2018_v17 }
 0xcc7   :  { %3039 = vmatpush3.msra.mxu0 %v1904_v24  ;;  %3083 = vmatprep.subr.mxu1 %v3321_v0 }
 0xcc8   :  { %3040 = vmatprep.subr.mxu0 %v3321_v0  ;;  %3084 = vmatpush3.msra.mxu1 %v2017_v54 }
 0xcc9   :  { %3041 = vmatpush3.msra.mxu0 %v1903_v16  ;;  %3085 = vmatprep.subr.mxu1 %v3321_v0 }
 0xcca   :  { %3042 = vmatprep.subr.mxu0 %v3321_v0  ;;  %3086 = vmatpush3.msra.mxu1 %v2016_v55 }
 0xccb   :  { %3043 = vmatpush3.msra.mxu0 %v1902_v18  ;;  %3087 = vmatprep.subr.mxu1 %v3321_v0 }
 0xccc   :  { %3044 = vmatprep.subr.mxu0 %v3321_v0 }
 0xccd   :  { %3045 = vmatpush3.msra.mxu0 %v1901_v19 }
 0xcce   :  { %3046 = vmatprep.subr.mxu0 %v3321_v0 }
 0xccf   :  { %3047 = vmatpush3.msra.mxu0 %v1900_v20 }
 0xcd0   :  { %3048 = vmatprep.subr.mxu0 %v3321_v0 }
 0xcd1   :  { %3049 = vmatpush3.msra.mxu0 %v1899_v21 }
 0xcd2   :  { %3050 = vmatprep.subr.mxu0 %v3321_v0 }
 0xcd3   :  { %v3135_v25 = vpop.eup %3134  ;;  %3051 = vmatpush3.msra.mxu0 %v1898_v22 }
 0xcd4   :  { %3052 = vmatprep.subr.mxu0 %v3321_v0  ;;  %v1876_v28 = vmul.f32 %v3135_v25, %v3758_v56  ;;  %v2015_v56 = vld [vmem:[#allocation13 + $0x2a0] sm:$0xff] }
 0xcd5   :  { %3053 = vmatpush3.msra.mxu0 %v1897_v23  ;;  %3088 = vmatpush3.msra.mxu1 %v2015_v56 }
 0xcd6   :  { %3054 = vmatprep.subr.mxu0 %v3321_v0  ;;  %v1883_v31 = vmul.f32 %v2157_v26, %v1876_v28  ;;  %3089 = vmatprep.subr.mxu1 %v3321_v0 }
 0xcd7   :  { %3055 = vmatpush3.msra.mxu0 %v1896_v27  ;;  %3090 = vmatpush3.msra.mxu1 %v2014_v57 }
 0xcd8   :  { %3056 = vmatprep.subr.mxu0 %v3321_v0  ;;  %v1890_v33 = vadd.f32 %v2158_v29, %v1883_v31  ;;  %3091 = vmatprep.subr.mxu1 %v3321_v0 }
 0xcd9   :  { %3057 = vmatpush3.msra.mxu0 %v1895_v30  ;;  %3092 = vmatpush3.msra.mxu1 %v2013_v58 }
 0xcda   :  { %3058 = vmatprep.subr.mxu0 %v3321_v0  ;;  %v1891_v35 = vmax.f32 %v1890_v33, 0.0  ;;  %3093 = vmatprep.subr.mxu1 %v3321_v0 }
 0xcdb   :  { %3059 = vmatpush3.msra.mxu0 %v1894_v32  ;;  %3094 = vmatpush3.msra.mxu1 %v2012_v59 }
 0xcdc   :  { %3060 = vmatprep.subr.mxu0 %v3321_v0  ;;  %3095 = vmatprep.subr.mxu1 %v3321_v0  ;;  %v2163_v0 = vld [vmem:[%s3824_s8 + $0x5] ss:$0 sm:$0xff] }
 0xcdd   :  { %3061 = vmatpush3.msra.mxu0 %v1893_v34  ;;  %3096 = vmatpush3.msra.mxu1 %v2011_v60 }
 0xcde   :  { %3063 = vmatmul.mubr.f32.vlgmr.msra.gmra.mxu0 %v1891_v35 }
 0xd7e   :  { %v1770_v37 = vpop.f32.mrf.mxu0 }
 0xd7f   :  { %v1771_v38 = vadd.f32 %v2156_v36, %v1770_v37 }
 0xd80   :  { %v2994_v39 = vpop.f32.mrf.mxu0 }
 0xd81   :  { %1774 = vst [vmem:[#allocation14 + $0x20] sm:$0xff] %v1771_v38 }
 0xd9e   :  { %v1975_v40 = vpop.f32.mrf.mxu0 }
 0xd9f   :  { %1983 = vadd.xlane.f32.xlu0 %v1975_v40 }
 0xda0   :  { %v3064_v41 = vpop.f32.mrf.mxu0 }
 0xe28   :  { %v1984_v44 = vpop.xlane.xlu0 %1983 }
 0xe29   :  { %v1985_v45 = vmul.f32 0.0078125, %v1984_v44 }
 0xe2b   :  { %v1986_v46 = vsub.f32 %v1975_v40, %v1985_v45 }
 0xe2d   :  { %v1987_v47 = vmul.f32 %v1986_v46, %v1986_v46 }
 0xe2f   :  { %1988 = vadd.xlane.f32.xlu1 %v1987_v47 }
 0xeb8   :  { %v1989_v61 = vpop.xlane.xlu1 %1988 }
 0xeb9   :  { %v1990_v62 = vmul.f32 0.0078125, %v1989_v61 }
 0xebb   :  { %v1991_v63 = vadd.f32 1e-05, %v1990_v62 }
 0xebd   :  { %3136 = vrsqrt.f32 %v1991_v63 }
 0xeca   :  { %v3137_v1 = vpop.eup %3136 }
 0xecb   :  { %v1993_v3 = vmul.f32 %v3137_v1, %v1986_v46 }
 0xecd   :  { %v2000_v5 = vmul.f32 %v2160_v2, %v1993_v3 }
 0xecf   :  { %v2007_v6 = vadd.f32 %v2161_v4, %v2000_v5 }
 0xed1   :  { %v2008_v8 = vadd.f32 %v3139_v7, %v2007_v6 }
 0xed3   :  { %v2009_v9 = vmax.f32 %v2008_v8, 0.0 }
 0xed5   :  { %3098 = vmatmul.mubr.f32.vlgmr.msra.gmra.mxu1 %v2009_v9 }
 0xf95   :  { %v2101_v10 = vpop.f32.mrf.mxu1 }
 0xf96   :  { %v2102_v11 = vadd.f32 %v2163_v0, %v2101_v10 }
 0xf97   :  { %v3099_v12 = vpop.f32.mrf.mxu1 }
 0xf98   :  { %2105 = vst [vmem:[#allocation14 + $0x28] sm:$0xff] %v2102_v11 }
 0xf99   :  { %3291 = shalt.err (!%p3288_p11)
}
 0xf9a   :  { %2115 = dma.vmem_to_hbm [thread:$0]  %s2113_s2, 768, %s3825_s9, [#allocation4]  }
 0xf9b   :  { %3308 = dma.done.wait [#allocation4], 768  }
 0xf9c   :  { %3309 = vsyncadd [#allocation4], 4294966528 }
 0xf9d   :  { %2119 = vsyncpa [#allocation3], 1 }
 0xf9e   :  { %2120 = vsyncpa [#allocation6], 1 }
 0xf9f   :  { %2121 = vsyncpa [#allocation9], 1 }
 0xfa0   :  { %2122 = vsyncpa [#allocation12], 1 }
 0xfa1   :  { %2123 = vsyncpa [#allocation4], 1 }

</bundles_post_ra>
